<compile_context>
chip_gen: v6e
topology: v6e:2x2x1
jax: 0.10.0
libtpu: 0.0.40
codegen_flags: <defaults>
</compile_context>

<pallas_src>
import functools

import jax
import jax.numpy as jnp
from jax.experimental import pallas as pl
from jax.experimental.pallas import tpu as pltpu

NEG_SLOPE = 0.01   # PyTorch nn.LeakyReLU default
LANE = 128         # TPU lane width
QUANTUM = 128      # batch padding quantum (multiple of the bf16 sublane tile 16)


def _round_up(v, m):
    return ((v + m - 1) // m) * m


def _leaky_relu(x):
    # max(x, 0.01*x) == LeakyReLU(x) for slope in (0,1): 2 VALU ops.
    return jnp.maximum(x, NEG_SLOPE * x)


def _choose_tiling(B, max_tile_b):
    """Pick (tile_b, grid_len, B_pad): tile_b multiple of 128, even grid >= 2."""
    max_tile_b = max(QUANTUM, (max_tile_b // QUANTUM) * QUANTUM)
    n_units = pl.cdiv(B, QUANTUM)                      # 128-row units (bounded pad)
    grid_len = max(2, pl.cdiv(n_units * QUANTUM, max_tile_b))
    grid_len += grid_len % 2                           # even -> both v7x TCs busy
    units_per_tile = pl.cdiv(n_units, grid_len)
    tile_b = units_per_tile * QUANTUM
    B_pad = tile_b * grid_len
    return tile_b, grid_len, B_pad


def mlp_kernel(x_ref,
               w1_ref, b1_ref,
               w2_ref, b2_ref,
               w3_ref, b3_ref,
               w4_ref, b4_ref,
               o_ref):
    # x arrives f32 from HBM; cast to bf16 in-kernel (hidden under MXU work).
    x = x_ref[...].astype(jnp.bfloat16)

    h = jnp.dot(x, w1_ref[...], preferred_element_type=jnp.float32) + b1_ref[...]
    h = _leaky_relu(h)

    h = jnp.dot(h.astype(jnp.bfloat16), w2_ref[...],
                preferred_element_type=jnp.float32) + b2_ref[...]
    h = _leaky_relu(h)

    h = jnp.dot(h.astype(jnp.bfloat16), w3_ref[...],
                preferred_element_type=jnp.float32) + b3_ref[...]
    h = _leaky_relu(h)

    # Final layer padded to 128 lane-dense output columns; padded columns have
    # f32 bias -1e30, so exp(logit - max) underflows to exactly 0 below.
    logits = jnp.dot(h.astype(jnp.bfloat16), w4_ref[...],
                     preferred_element_type=jnp.float32) + b4_ref[...]

    # Softmax over dim=1 (class axis), max-subtracted, f32 throughout.
    m = jnp.max(logits, axis=-1, keepdims=True)
    e = jnp.exp(logits - m)
    denom = jnp.sum(e, axis=-1, keepdims=True)
    # Exact divide (not approx reciprocal): rows sum to 1 to f32 accuracy and
    # the extra VPU/EUP work is free under the MXU-bound regime.
    o_ref[...] = (e / denom).astype(o_ref.dtype)


def prepare_params(params):
    """One-time prep (outside the per-call path): bf16 weights, padded layer 4."""
    num_classes = params["w4"].shape[1]
    c_pad = max(LANE, _round_up(num_classes, LANE))
    w4, b4 = params["w4"], params["b4"]
    if c_pad != num_classes:
        w4 = jnp.pad(w4, ((0, 0), (0, c_pad - num_classes)))
        # -1e30 bias (kept f32) -> padded "classes" vanish under softmax.
        b4 = jnp.pad(b4, ((0, 0), (0, c_pad - num_classes)), constant_values=-1e30)
    return {
        "w1": params["w1"].astype(jnp.bfloat16), "b1": params["b1"],
        "w2": params["w2"].astype(jnp.bfloat16), "b2": params["b2"],
        "w3": params["w3"].astype(jnp.bfloat16), "b3": params["b3"],
        "w4": w4.astype(jnp.bfloat16),           "b4": b4,
    }


@functools.partial(jax.jit, static_argnames=("num_classes", "max_tile_b", "out_dtype"))
def mlp_forward(x, prep, *, num_classes, max_tile_b=2048, out_dtype=jnp.bfloat16):
    """x: (B, 128) float32. prep: output of prepare_params()."""
    B, D_in = x.shape
    C_pad = prep["w4"].shape[1]

    tile_b, grid_len, B_pad = _choose_tiling(B, max_tile_b)
    if B_pad != B:
        x = jnp.pad(x, ((0, B_pad - B), (0, 0)))

    full = lambda a: pl.BlockSpec(a.shape, lambda i: (0, 0))

    out_padded = pl.pallas_call(
        mlp_kernel,
        out_shape=jax.ShapeDtypeStruct((B_pad, C_pad), out_dtype),
        grid=(grid_len,),
        in_specs=[
            pl.BlockSpec((tile_b, D_in), lambda i: (i, 0)),   # x tile
            full(prep["w1"]), full(prep["b1"]),
            full(prep["w2"]), full(prep["b2"]),
            full(prep["w3"]), full(prep["b3"]),
            full(prep["w4"]), full(prep["b4"]),
        ],
        out_specs=pl.BlockSpec((tile_b, C_pad), lambda i: (i, 0)),
        compiler_params=pltpu.CompilerParams(
            dimension_semantics=("parallel",),
            vmem_limit_bytes=48 * 1024 * 1024,   # below v7x 64 MiB, above v5e default
        ),
    )(x, prep["w1"], prep["b1"], prep["w2"], prep["b2"],
      prep["w3"], prep["b3"], prep["w4"], prep["b4"])

    return out_padded[:B, :num_classes]


def init_params(key, num_classes):
    dims = [(128, 512), (512, 256), (256, 128), (128, num_classes)]
    params = {}
    for idx, (fan_in, fan_out) in enumerate(dims, start=1):
        key, kw, kb = jax.random.split(key, 3)
        # PyTorch nn.Linear default init: U(-1/sqrt(fan_in), 1/sqrt(fan_in))
        bound = 1.0 / (fan_in ** 0.5)
        params[f"w{idx}"] = jax.random.uniform(
            kw, (fan_in, fan_out), jnp.float32, -bound, bound)
        params[f"b{idx}"] = jax.random.uniform(
            kb, (1, fan_out), jnp.float32, -bound, bound)
    return params


def reference_forward(x, params):
    """Pure-JAX f32 reference of the PyTorch module."""
    h = x
    for idx in range(1, 4):
        h = h @ params[f"w{idx}"] + params[f"b{idx}"]
        h = jnp.where(h >= 0, h, NEG_SLOPE * h)
    logits = h @ params["w4"] + params["b4"]
    return jax.nn.softmax(logits, axis=1)


if __name__ == "__main__":
    num_classes = 10
    batch = 256   # demo batch -> tile_b=128, grid=2 (both v7x TensorCores active)

    key = jax.random.PRNGKey(0)
    key, kx = jax.random.split(key)
    x = jax.random.normal(kx, (batch, 128), jnp.float32)
    params = init_params(key, num_classes)
    prep = prepare_params(params)   # one-time bf16 cast + lane-dense padding

    out = mlp_forward(x, prep, num_classes=num_classes)
    out = jax.block_until_ready(out)

    ref = reference_forward(x, params)
    assert out.shape == (batch, num_classes)
    out_f32 = out.astype(jnp.float32)
    # bf16 matmul inputs + bf16 output are intentional (perf); tolerance is
    # loose vs. the f32 reference but tight for probabilities in [0, 1].
    assert jnp.allclose(out_f32, ref, atol=2e-2, rtol=2e-2), "mismatch vs reference"
    assert jnp.allclose(jnp.sum(out_f32, axis=1), 1.0, atol=5e-3), \
        "softmax rows must sum to 1"

    print("KERNEL_OK")
</pallas_src>

<mosaic_0001>
module attributes {stable_mosaic.version = 11 : i64} {
  func.func @mlp_kernel(%arg0: i32, %arg1: memref<128x128xf32, #tpu.memory_space<vmem>>, %arg2: memref<128x512xbf16, #tpu.memory_space<vmem>>, %arg3: memref<1x512xf32, #tpu.memory_space<vmem>>, %arg4: memref<512x256xbf16, #tpu.memory_space<vmem>>, %arg5: memref<1x256xf32, #tpu.memory_space<vmem>>, %arg6: memref<256x128xbf16, #tpu.memory_space<vmem>>, %arg7: memref<1x128xf32, #tpu.memory_space<vmem>>, %arg8: memref<128x128xbf16, #tpu.memory_space<vmem>>, %arg9: memref<1x128xf32, #tpu.memory_space<vmem>>, %arg10: memref<128x128xbf16, #tpu.memory_space<vmem>>) attributes {dimension_semantics = [#tpu.dimension_semantics<parallel>], iteration_bounds = array<i64: 2>, scalar_prefetch = 0 : i64, scratch_operands = 0 : i64, tpu.core_type = #tpu.core_type<tc>, window_params = [{transform_indices = @transform_0, window_bounds = array<i64: 128, 128>}, {pipeline_mode = #tpu.pipeline_mode<synchronous>, transform_indices = @transform_1, window_bounds = array<i64: 128, 512>}, {pipeline_mode = #tpu.pipeline_mode<synchronous>, transform_indices = @transform_2, window_bounds = array<i64: 1, 512>}, {pipeline_mode = #tpu.pipeline_mode<synchronous>, transform_indices = @transform_3, window_bounds = array<i64: 512, 256>}, {pipeline_mode = #tpu.pipeline_mode<synchronous>, transform_indices = @transform_4, window_bounds = array<i64: 1, 256>}, {pipeline_mode = #tpu.pipeline_mode<synchronous>, transform_indices = @transform_5, window_bounds = array<i64: 256, 128>}, {pipeline_mode = #tpu.pipeline_mode<synchronous>, transform_indices = @transform_6, window_bounds = array<i64: 1, 128>}, {pipeline_mode = #tpu.pipeline_mode<synchronous>, transform_indices = @transform_7, window_bounds = array<i64: 128, 128>}, {pipeline_mode = #tpu.pipeline_mode<synchronous>, transform_indices = @transform_8, window_bounds = array<i64: 1, 128>}, {transform_indices = @transform_9, window_bounds = array<i64: 128, 128>}]} {
    %c0 = arith.constant 0 : index
    %c0_0 = arith.constant 0 : index
    %0 = vector.load %arg1[%c0, %c0_0] : memref<128x128xf32, #tpu.memory_space<vmem>>, vector<128x128xf32>
    %1 = arith.truncf %0 : vector<128x128xf32> to vector<128x128xbf16>
    %c0_1 = arith.constant 0 : index
    %c0_2 = arith.constant 0 : index
    %2 = vector.load %arg2[%c0_1, %c0_2] : memref<128x512xbf16, #tpu.memory_space<vmem>>, vector<128x512xbf16>
    %cst = arith.constant dense<0.000000e+00> : vector<128x512xf32>
    %3 = tpu.matmul %1, %2, %cst {dimension_numbers = #tpu.dot_dimension_numbers<[1], [0], [0], [1], [0, 0, 1, 1], [], []>} : vector<128x128xbf16>, vector<128x512xbf16>, vector<128x512xf32> -> vector<128x512xf32>
    %c0_3 = arith.constant 0 : index
    %c0_4 = arith.constant 0 : index
    %4 = vector.load %arg3[%c0_3, %c0_4] : memref<1x512xf32, #tpu.memory_space<vmem>>, vector<1x512xf32>
    %5 = vector.broadcast %4 : vector<1x512xf32> to vector<128x512xf32>
    %6 = arith.addf %3, %5 : vector<128x512xf32>
    %cst_5 = arith.constant 0.00999999977 : f32
    %7 = vector.broadcast %cst_5 : f32 to vector<128x512xf32>
    %8 = arith.mulf %7, %6 : vector<128x512xf32>
    %9 = arith.maximumf %6, %8 : vector<128x512xf32>
    %10 = arith.truncf %9 : vector<128x512xf32> to vector<128x512xbf16>
    %c0_6 = arith.constant 0 : index
    %c0_7 = arith.constant 0 : index
    %11 = vector.load %arg4[%c0_6, %c0_7] : memref<512x256xbf16, #tpu.memory_space<vmem>>, vector<512x256xbf16>
    %cst_8 = arith.constant dense<0.000000e+00> : vector<128x256xf32>
    %12 = tpu.matmul %10, %11, %cst_8 {dimension_numbers = #tpu.dot_dimension_numbers<[1], [0], [0], [1], [0, 0, 1, 1], [], []>} : vector<128x512xbf16>, vector<512x256xbf16>, vector<128x256xf32> -> vector<128x256xf32>
    %c0_9 = arith.constant 0 : index
    %c0_10 = arith.constant 0 : index
    %13 = vector.load %arg5[%c0_9, %c0_10] : memref<1x256xf32, #tpu.memory_space<vmem>>, vector<1x256xf32>
    %14 = vector.broadcast %13 : vector<1x256xf32> to vector<128x256xf32>
    %15 = arith.addf %12, %14 : vector<128x256xf32>
    %cst_11 = arith.constant 0.00999999977 : f32
    %16 = vector.broadcast %cst_11 : f32 to vector<128x256xf32>
    %17 = arith.mulf %16, %15 : vector<128x256xf32>
    %18 = arith.maximumf %15, %17 : vector<128x256xf32>
    %19 = arith.truncf %18 : vector<128x256xf32> to vector<128x256xbf16>
    %c0_12 = arith.constant 0 : index
    %c0_13 = arith.constant 0 : index
    %20 = vector.load %arg6[%c0_12, %c0_13] : memref<256x128xbf16, #tpu.memory_space<vmem>>, vector<256x128xbf16>
    %cst_14 = arith.constant dense<0.000000e+00> : vector<128x128xf32>
    %21 = tpu.matmul %19, %20, %cst_14 {dimension_numbers = #tpu.dot_dimension_numbers<[1], [0], [0], [1], [0, 0, 1, 1], [], []>} : vector<128x256xbf16>, vector<256x128xbf16>, vector<128x128xf32> -> vector<128x128xf32>
    %c0_15 = arith.constant 0 : index
    %c0_16 = arith.constant 0 : index
    %22 = vector.load %arg7[%c0_15, %c0_16] : memref<1x128xf32, #tpu.memory_space<vmem>>, vector<1x128xf32>
    %23 = vector.broadcast %22 : vector<1x128xf32> to vector<128x128xf32>
    %24 = arith.addf %21, %23 : vector<128x128xf32>
    %cst_17 = arith.constant 0.00999999977 : f32
    %25 = vector.broadcast %cst_17 : f32 to vector<128x128xf32>
    %26 = arith.mulf %25, %24 : vector<128x128xf32>
    %27 = arith.maximumf %24, %26 : vector<128x128xf32>
    %28 = arith.truncf %27 : vector<128x128xf32> to vector<128x128xbf16>
    %c0_18 = arith.constant 0 : index
    %c0_19 = arith.constant 0 : index
    %29 = vector.load %arg8[%c0_18, %c0_19] : memref<128x128xbf16, #tpu.memory_space<vmem>>, vector<128x128xbf16>
    %cst_20 = arith.constant dense<0.000000e+00> : vector<128x128xf32>
    %30 = tpu.matmul %28, %29, %cst_20 {dimension_numbers = #tpu.dot_dimension_numbers<[1], [0], [0], [1], [0, 0, 1, 1], [], []>} : vector<128x128xbf16>, vector<128x128xbf16>, vector<128x128xf32> -> vector<128x128xf32>
    %c0_21 = arith.constant 0 : index
    %c0_22 = arith.constant 0 : index
    %31 = vector.load %arg9[%c0_21, %c0_22] : memref<1x128xf32, #tpu.memory_space<vmem>>, vector<1x128xf32>
    %32 = vector.broadcast %31 : vector<1x128xf32> to vector<128x128xf32>
    %33 = arith.addf %30, %32 : vector<128x128xf32>
    %cst_23 = arith.constant dense<0xFF800000> : vector<128xf32>
    %34 = vector.multi_reduction <maximumf>, %33, %cst_23 [1] : vector<128x128xf32> to vector<128xf32>
    %35 = vector.shape_cast %34 : vector<128xf32> to vector<128x1xf32>
    %36 = vector.broadcast %35 : vector<128x1xf32> to vector<128x128xf32>
    %37 = arith.subf %33, %36 : vector<128x128xf32>
    %38 = math.exp %37 : vector<128x128xf32>
    %cst_24 = arith.constant dense<0.000000e+00> : vector<128xf32>
    %39 = vector.multi_reduction <add>, %38, %cst_24 [1] : vector<128x128xf32> to vector<128xf32>
    %40 = vector.shape_cast %39 : vector<128xf32> to vector<128x1xf32>
    %41 = vector.broadcast %40 : vector<128x1xf32> to vector<128x128xf32>
    %42 = arith.divf %38, %41 : vector<128x128xf32>
    %43 = arith.truncf %42 : vector<128x128xf32> to vector<128x128xbf16>
    %c0_25 = arith.constant 0 : index
    %c0_26 = arith.constant 0 : index
    %44 = vector.load %arg10[%c0_25, %c0_26] : memref<128x128xbf16, #tpu.memory_space<vmem>>, vector<128x128xbf16>
    tpu.vector_store %arg10[%c0_25, %c0_26], %43 {strides = array<i32>} : memref<128x128xbf16, #tpu.memory_space<vmem>>, vector<128x128xbf16>,
    return
  }
  func.func @transform_0(%arg0: i32) -> (i32, i32) {
    %c0_i32 = arith.constant 0 : i32
    %c0_i32_0 = arith.constant 0 : i32
    return %arg0, %c0_i32 : i32, i32
  }
  func.func @transform_1(%arg0: i32) -> (i32, i32) {
    %c0_i32 = arith.constant 0 : i32
    %c0_i32_0 = arith.constant 0 : i32
    %c0_i32_1 = arith.constant 0 : i32
    return %c0_i32, %c0_i32_0 : i32, i32
  }
  func.func @transform_2(%arg0: i32) -> (i32, i32) {
    %c0_i32 = arith.constant 0 : i32
    %c0_i32_0 = arith.constant 0 : i32
    %c0_i32_1 = arith.constant 0 : i32
    return %c0_i32, %c0_i32_0 : i32, i32
  }
  func.func @transform_3(%arg0: i32) -> (i32, i32) {
    %c0_i32 = arith.constant 0 : i32
    %c0_i32_0 = arith.constant 0 : i32
    %c0_i32_1 = arith.constant 0 : i32
    return %c0_i32, %c0_i32_0 : i32, i32
  }
  func.func @transform_4(%arg0: i32) -> (i32, i32) {
    %c0_i32 = arith.constant 0 : i32
    %c0_i32_0 = arith.constant 0 : i32
    %c0_i32_1 = arith.constant 0 : i32
    return %c0_i32, %c0_i32_0 : i32, i32
  }
  func.func @transform_5(%arg0: i32) -> (i32, i32) {
    %c0_i32 = arith.constant 0 : i32
    %c0_i32_0 = arith.constant 0 : i32
    %c0_i32_1 = arith.constant 0 : i32
    return %c0_i32, %c0_i32_0 : i32, i32
  }
  func.func @transform_6(%arg0: i32) -> (i32, i32) {
    %c0_i32 = arith.constant 0 : i32
    %c0_i32_0 = arith.constant 0 : i32
    %c0_i32_1 = arith.constant 0 : i32
    return %c0_i32, %c0_i32_0 : i32, i32
  }
  func.func @transform_7(%arg0: i32) -> (i32, i32) {
    %c0_i32 = arith.constant 0 : i32
    %c0_i32_0 = arith.constant 0 : i32
    %c0_i32_1 = arith.constant 0 : i32
    return %c0_i32, %c0_i32_0 : i32, i32
  }
  func.func @transform_8(%arg0: i32) -> (i32, i32) {
    %c0_i32 = arith.constant 0 : i32
    %c0_i32_0 = arith.constant 0 : i32
    %c0_i32_1 = arith.constant 0 : i32
    return %c0_i32, %c0_i32_0 : i32, i32
  }
  func.func @transform_9(%arg0: i32) -> (i32, i32) {
    %c0_i32 = arith.constant 0 : i32
    %c0_i32_0 = arith.constant 0 : i32
    return %arg0, %c0_i32 : i32, i32
  }
}

</mosaic_0001>

<bundles_post_ra>
// kernel: mlp_forward.1
= control target key start
LH: loop header
LB: loop body
LE: loop exit
PB: predicated region body
PF: predicated region fallthrough
CT: control target
= control target key end

     0   :  { %14 = vsyncpa [#allocation3], 0  ;;  %s4010_s0 = inlined_call_operand.hbm [shape: f32[256,128], index: 0, kind: input, shape index: {}]   ;;  %s4011_s1 = inlined_call_operand.hbm [shape: bf16[128,512], index: 1, kind: input, shape index: {}]   ;;  %s4012_s2 = inlined_call_operand.hbm [shape: f32[1,512], index: 2, kind: input, shape index: {}]   ;;  %s4013_s3 = inlined_call_operand.hbm [shape: bf16[512,256], index: 3, kind: input, shape index: {}]   ;;  %s4014_s4 = inlined_call_operand.vmem [shape: f32[1,256], index: 4, kind: input, shape index: {}]   ;;  %s4015_s5 = inlined_call_operand.hbm [shape: bf16[256,128], index: 5, kind: input, shape index: {}]   ;;  %s4016_s6 = inlined_call_operand.vmem [shape: f32[1,128], index: 6, kind: input, shape index: {}]   ;;  %s4017_s7 = inlined_call_operand.hbm [shape: bf16[128,128], index: 7, kind: input, shape index: {}]   ;;  %s4018_s8 = inlined_call_operand.vmem [shape: f32[1,128], index: 8, kind: input, shape index: {}]   ;;  %s4019_s9 = inlined_call_operand.vmem [shape: bf16[256,128], index: 9, kind: output, shape index: {}]  }
   0x1   :  { %16 = vsyncpa [#allocation3 + $0x1], 0 }
   0x2   :  { %17 = vsyncpa [#allocation5], 0 }
   0x3   :  { %18 = vsyncpa [#allocation8], 0 }
   0x4   :  { %19 = vsyncpa [#allocation11], 0  ;;  %s3467_s30 = smov 0   ;;  %s3469_s10 = smov 0  }
   0x5   :  { %s3471_s11 = smov 0   ;;  %s3473_s12 = smov 0  }
   0x6 LB: > { %s3404_s13 = smov [#allocation4]   ;;  %s4020_s15 = sadd.s32 4294967295, %s3402_s12   ;;  %s3402_s12 = sphi %s3473_s12, %s4042_s12   ;;  %s3398_s11 = sphi %s3471_s11, %s4041_s11   ;;  %s3394_s10 = sphi %s3469_s10, %s4040_s10   ;;  %s3390_s30 = sphi %s3467_s30, %s4039_s30  }
   0x7   : > { %s262_s14 = sshll.u32 %s3404_s13, 4  ;;  %p2534_p0 = scmp.ge.s32.totalorder %s3402_s12, 1  ;;  %s263_s14 = int_to_ptr.vmem [resolvable:$true] %s262_s14 }
   0x8   : > { %p3491_p1 = scmp.eq.s32.totalorder %s4020_s15, 0  ;;  %p250_p2 = scmp.lt.s32.totalorder %s3402_s12, 3 }
   0x9   : > { %s3405_s18 = smov [#allocation7]   ;;  %s3406_s21 = smov [#allocation6]  }
   0xa   : > { %s4027_s16 = scalar_select %p3491_p1, 1, 0 }
   0xb   : > { %p3496_p3 = pnand %p2534_p0, %p250_p2  ;;  %s286_s19 = sshll.u32 %s3405_s18, 4  ;;  %s3508_s19 = int_to_ptr.vmem [resolvable:$true] %s286_s19 }
   0xc   : > { %s3510_s22 = sshll.u32 %s3406_s21, 4  ;;  %s3209_s24 = scalar_lea.vmem %s263_s14, 4096  ;;  %s277_s22 = int_to_ptr.vmem [resolvable:$true] %s3510_s22 }
   0xd   : > { %s4028_s17 = scalar_select %p3496_p3, 1, 0 }
   0xe   : > { %p2891_p4 = pneg %p3496_p3  ;;  %p3210_p7 = scmp.ne.s32.totalorder %s263_s14, %s3209_s24 }
   0xf   : > { %p3217_p10 = scmp.lt.s32.totalorder %s263_s14, %s263_s14  ;;  %p3218_p11 = scmp.lt.s32.totalorder %s3209_s24, %s3209_s24 }
  0x10   : > { %p3504_p5 = pnand %p2891_p4, %p3491_p1 }
  0x11   : > { %p3219_p12 = por %p3218_p11, %p3217_p10 }
  0x12   : > { %p3514_p6 = pneg %p3504_p5 }
  0x14   : > { %p3212_p8 = pnand %p3210_p7, %p3514_p6 }
  0x16   : > { %p3213_p9 = pneg %p3212_p8 }
  0x18   : > { %p3220_p13 = pnand %p3219_p12, %p3213_p9 }
  0x1a   : > { %3223 = shalt.err (!%p3220_p13)
}
  0x1b   : > { %s3407_s25 = smov 256   ;;  %s3408_s26 = smov 16  }
  0x1c   : > { %2894 = dma.hbm_to_vmem [thread:$0]  (!%p3504_p5), %s4011_s1, 4096, %s263_s14, [#allocation5], %s3407_s25, %s3407_s25, %s3408_s26  }
  0x1d   : > { %s3235_s29 = scalar_lea.vmem %s3508_s19, 8192  ;;  %p3243_p7 = scmp.lt.s32.totalorder %s3508_s19, %s3508_s19 }
  0x1e   : > { %p3236_p0 = scmp.ne.s32.totalorder %s3508_s19, %s3235_s29  ;;  %p3244_p8 = scmp.lt.s32.totalorder %s3235_s29, %s3235_s29 }
  0x20   : > { %p3238_p2 = pnand %p3236_p0, %p3514_p6  ;;  %p3245_p9 = por %p3244_p8, %p3243_p7 }
  0x22   : > { %p3239_p4 = pneg %p3238_p2 }
  0x24   : > { %p3246_p10 = pnand %p3245_p9, %p3239_p4 }
  0x26   : > { %3249 = shalt.err (!%p3246_p10)
}
  0x27   : > { %s4021_s13 = smov 128   ;;  %s4022_s18 = smov 8  }
  0x28   : > { %2900 = dma.hbm_to_vmem [thread:$0]  (!%p3504_p5), %s4013_s3, 8192, %s3508_s19, [#allocation8], %s4021_s13, %s4021_s13, %s4022_s18  }
  0x29   : > { %s3261_s24 = scalar_lea.vmem %s277_s22, 64  ;;  %p3269_p0 = scmp.lt.s32.totalorder %s277_s22, %s277_s22 }
  0x2a   : > { %p3262_p11 = scmp.ne.s32.totalorder %s277_s22, %s3261_s24  ;;  %p3270_p2 = scmp.lt.s32.totalorder %s3261_s24, %s3261_s24 }
  0x2c   : > { %p3264_p12 = pnand %p3262_p11, %p3514_p6  ;;  %p3271_p4 = por %p3270_p2, %p3269_p0 }
  0x2e   : > { %p3265_p13 = pneg %p3264_p12 }
  0x30   : > { %p3272_p7 = pnand %p3271_p4, %p3265_p13 }
  0x32   : > { %3275 = shalt.err (!%p3272_p7)
}
  0x33   : > { %2897 = dma.hbm_to_vmem [thread:$0]  (!%p3504_p5), %s4012_s2, 64, %s277_s22, [#allocation5]  }
  0x34   : > { %s3411_s27 = smov [#allocation9]  }
  0x35   : > { %s302_s19 = sshll.u32 %s3411_s27, 4  ;;  %s303_s19 = int_to_ptr.vmem [resolvable:$true] %s302_s19 }
  0x36   : > { %s3287_s28 = scalar_lea.vmem %s303_s19, 2048  ;;  %p3295_p11 = scmp.lt.s32.totalorder %s303_s19, %s303_s19 }
  0x37   : > { %p3288_p8 = scmp.ne.s32.totalorder %s303_s19, %s3287_s28  ;;  %p3296_p12 = scmp.lt.s32.totalorder %s3287_s28, %s3287_s28 }
  0x39   : > { %p3290_p9 = pnand %p3288_p8, %p3514_p6  ;;  %p3297_p0 = por %p3296_p12, %p3295_p11 }
  0x3b   : > { %p3291_p10 = pneg %p3290_p9 }
  0x3d   : > { %p3298_p13 = pnand %p3297_p0, %p3291_p10 }
  0x3f   : > { %3301 = shalt.err (!%p3298_p13)
}
  0x40   : > { %s3412_s29 = smov 64   ;;  %s3413_s14 = smov 4  }
  0x41   : > { %2903 = dma.hbm_to_vmem [thread:$0]  (!%p3504_p5), %s4015_s5, 2048, %s303_s19, [#allocation8], %s3412_s29, %s3412_s29, %s3413_s14  }
  0x42   : > { %s3414_s24 = smov [#allocation10]  }
  0x43   : > { %s318_s25 = sshll.u32 %s3414_s24, 4  ;;  %s319_s25 = int_to_ptr.vmem [resolvable:$true] %s318_s25 }
  0x44   : > { %s3313_s26 = scalar_lea.vmem %s319_s25, 1024  ;;  %p3321_p8 = scmp.lt.s32.totalorder %s319_s25, %s319_s25 }
  0x45   : > { %p3314_p2 = scmp.ne.s32.totalorder %s319_s25, %s3313_s26  ;;  %p3322_p9 = scmp.lt.s32.totalorder %s3313_s26, %s3313_s26 }
  0x47   : > { %p3316_p4 = pnand %p3314_p2, %p3514_p6  ;;  %p3323_p10 = por %p3322_p9, %p3321_p8 }
  0x49   : > { %p3317_p7 = pneg %p3316_p4 }
  0x4b   : > { %p3324_p11 = pnand %p3323_p10, %p3317_p7 }
  0x4d   : > { %3327 = shalt.err (!%p3324_p11)
}
  0x4e   : > { %2906 = dma.hbm_to_vmem [thread:$0]  (!%p3504_p5), %s4017_s7, 1024, %s319_s25, [#allocation11], %s3412_s29, %s3412_s29, %s3413_s14  }
  0x4f   : > { %s3563_s23 = sadd.s32 1, %s3402_s12   ;;  %s32_s19 = sadd.s32 1, %s3398_s11 }
  0x50   : > { %s29_s20 = ssub.s32 %s3402_s12, %s3563_s23  ;;  %p39_p12 = scmp.ne.s32.totalorder %s3398_s11, %s3394_s10 }
  0x51   : > { %p30_p6 = scmp.eq.s32.totalorder %s29_s20, 0  ;;  %p40_p0 = scmp.eq.s32.totalorder %s3402_s12, 0 }
  0x52   : > { %p45_p13 = scmp.ne.s32.totalorder %s3394_s10, %s3390_s30  ;;  %p2916_p7 = scmp.lt.s32.totalorder %s3402_s12, 2 }
  0x53   : > { %s3574_s21 = scalar_select %p30_p6, %s3398_s11, %s32_s19  }
  0x54   : > { %p41_p2 = por %p40_p0, %p39_p12  ;;  %p3578_p4 = por %p3491_p1, %p45_p13 }
  0x55   : > { %s335_s24 = sand.u32 1, %s3398_s11   ;;  %s2693_s14 = sshll.u32 %s3402_s12, 11 }
  0x56   : > { %s4031_s22 = scalar_select %p3578_p4, 1, 0 }
  0x57   : > { %s2541_s29 = sshll.u32 %s335_s24, 7  ;;  %s3588_s27 = scalar_lea.hbm %s4010_s0, %s2693_s14 }
  0x58   : > { %s339_s30 = scalar_lea.vmem [#allocation2], %s2541_s29  ;;  %p3592_p5 = pnand %p2916_p7, %p41_p2 }
  0x59   : > { %s346_s28 = sshll.u32 %s339_s30, 4  ;;  %s3596_s19 = scalar_lea.sflag [#allocation3], %s335_s24  ;;  %s3590_s28 = int_to_ptr.vmem [resolvable:$true] %s346_s28 }
  0x5a   : > { %s3328_s15 = scalar_lea.hbm %s3588_s27, 2048  ;;  %p3330_p9 = pneg %p3592_p5 }
  0x5b   : > { %p3329_p8 = scmp.ne.s32.totalorder %s3588_s27, %s3328_s15  ;;  %s3333_s29 = scalar_lea.hbm %s4010_s0, 4096 }
  0x5c   : > { %p3334_p6 = scmp.lt.s32.totalorder %s3588_s27, %s4010_s0  ;;  %p3335_p12 = scmp.lt.s32.totalorder %s3333_s29, %s3328_s15 }
  0x5d   : > { %p3331_p10 = pnand %p3330_p9, %p3329_p8 }
  0x5e   : > { %p3336_p0 = por %p3335_p12, %p3334_p6 }
  0x5f   : > { %p3332_p11 = pneg %p3331_p10 }
  0x61   : > { %p3337_p13 = pnand %p3336_p0, %p3332_p11 }
  0x63   : > { %3340 = shalt.err (!%p3337_p13)
}
  0x64   : > { %s3341_s24 = scalar_lea.vmem %s3590_s28, 2048  ;;  %s3415_s13 = smov [#allocation2]  }
  0x65   : > { %p3342_p2 = scmp.ne.s32.totalorder %s3590_s28, %s3341_s24  ;;  %s3346_s18 = sshll.u32 %s3415_s13, 4  ;;  %s3347_s18 = int_to_ptr.vmem [resolvable:$false] %s3346_s18 }
  0x66   : > { %s3348_s14 = scalar_lea.vmem %s3347_s18, 4096  ;;  %p3349_p10 = scmp.lt.s32.totalorder %s3590_s28, %s3347_s18 }
  0x67   : > { %p3344_p7 = pnand %p3342_p2, %p3330_p9  ;;  %p3350_p1 = scmp.lt.s32.totalorder %s3348_s14, %s3341_s24 }
  0x69   : > { %p3345_p8 = pneg %p3344_p7  ;;  %p3351_p4 = por %p3350_p1, %p3349_p10 }
  0x6b   : > { %p3352_p3 = pnand %p3351_p4, %p3345_p8 }
  0x6d   : > { %3355 = shalt.err (!%p3352_p3)
}
  0x6e   : > { %s4033_s15 = smov 8   ;;  %s4034_s25 = smov 128  }
  0x6f   : > { %2910 = dma.hbm_to_vmem [thread:$0]  (!%p3592_p5), %s3588_s27, 2048, %s3590_s28, %s3596_s19, %s4034_s25, %s4034_s25, %s4033_s15  }
  0x70   : > { %p4035_p9 = scmp.ne.s32.totalorder %s4028_s17, 0 }
  0x71   : > { %s360_s13 = sand.u32 (!%p4035_p9), 1, %s3394_s10   ;;  %p4036_p1 = scmp.ne.s32.totalorder (!%p4035_p9), %s4031_s22, 0 }
  0x72   : > { %358 = sbr.rel (%p4035_p9) target bundleno = 1362 (0x552), region = 56  ;;  %s2545_s18 = sshll.u32 (!%p4035_p9), %s360_s13, 7 }
  0x73   : > { %s361_s29 = scalar_lea.sflag (!%p4035_p9), [#allocation3], %s360_s13  ;;  %s3623_s26 = scalar_lea.vmem (!%p4035_p9), [#allocation2], %s2545_s18 }
  0x77   : > { %3373 = dma.done.wait (%p4036_p1), %s361_s29, 2048  }
  0x78   : > { %3375 = vsyncadd (%p4036_p1), %s361_s29, 4294965248  ;;  %p4037_p3 = scmp.ne.s32.totalorder %s4027_s16, 0 }
  0x7a   : > { %3377 = dma.done.wait (%p4037_p3), [#allocation5], 4160  }
  0x7b   : > { %3379 = vsyncadd (%p4037_p3), [#allocation5], 4294963136 }
  0x7c   : > { %3381 = dma.done.wait (%p4037_p3), [#allocation8], 10240  }
  0x7d   : > { %3383 = vsyncadd (%p4037_p3), [#allocation8], 4294957056 }
  0x7e   : > { %3385 = dma.done.wait (%p4037_p3), [#allocation11], 1024  }
  0x7f   : > { %3387 = vsyncadd (%p4037_p3), [#allocation11], 4294966272  ;;  %v3416_v0 = vmov 0   ;;  %v2966_v1 = vld [vmem:[#allocation4 + $0xe4] ss:$16 sps:$4 sm:$0xff]   ;;  %v428_v34 = vld [vmem:[%s3623_s26 + $0x8] sm:$0xff] }
  0x80   : > { %697 = vmatprep.mubr.bf16.mxu0 %v3416_v0  ;;  %810 = vmatprep.mubr.bf16.mxu1 %v3416_v0  ;;  %v2968_v2 = vld [vmem:[#allocation4 + $0xec] ss:$16 sps:$4 sm:$0xff]   ;;  %v2970_v3 = vld [vmem:[#allocation4 + $0xe0] ss:$16 sps:$4 sm:$0xff]   ;;  %v2971_v4 = vld [vmem:[#allocation4 + $0xe8] ss:$16 sps:$4 sm:$0xff]  }
  0x81   : > { %665 = vmatprep.subr.bf16.mxu0 %v2966_v1  ;;  %778 = vmatprep.subr.bf16.mxu1 %v2968_v2  ;;  %v2972_v5 = vld [vmem:[#allocation4 + $0xc4] ss:$16 sps:$4 sm:$0xff]   ;;  %v2974_v6 = vld [vmem:[#allocation4 + $0xcc] ss:$16 sps:$4 sm:$0xff]   ;;  %v2976_v7 = vld [vmem:[#allocation4 + $0xc0] ss:$16 sps:$4 sm:$0xff]  }
  0x82   : > { %666 = vmatpush1.bf16.msra.mxu0 %v2970_v3  ;;  %779 = vmatpush1.bf16.msra.mxu1 %v2971_v4  ;;  %v2977_v8 = vld [vmem:[#allocation4 + $0xc8] ss:$16 sps:$4 sm:$0xff]   ;;  %v2978_v9 = vld [vmem:[#allocation4 + $0xa4] ss:$16 sps:$4 sm:$0xff]   ;;  %v2980_v10 = vld [vmem:[#allocation4 + $0xac] ss:$16 sps:$4 sm:$0xff]  }
  0x83   : > { %667 = vmatprep.subr.bf16.mxu0 %v2972_v5  ;;  %780 = vmatprep.subr.bf16.mxu1 %v2974_v6  ;;  %v2982_v11 = vld [vmem:[#allocation4 + $0xa0] ss:$16 sps:$4 sm:$0xff]   ;;  %v2983_v12 = vld [vmem:[#allocation4 + $0xa8] ss:$16 sps:$4 sm:$0xff]   ;;  %v2984_v13 = vld [vmem:[#allocation4 + $0x84] ss:$16 sps:$4 sm:$0xff]  }
  0x84   : > { %v2986_v14 = vld [vmem:[#allocation4 + $0x8c] ss:$16 sps:$4 sm:$0xff]   ;;  %v2988_v15 = vld [vmem:[#allocation4 + $0x80] ss:$16 sps:$4 sm:$0xff]   ;;  %v2989_v16 = vld [vmem:[#allocation4 + $0x88] ss:$16 sps:$4 sm:$0xff]  }
  0x85   : > { %v2990_v17 = vld [vmem:[#allocation4 + $0x64] ss:$16 sps:$4 sm:$0xff]   ;;  %v2992_v18 = vld [vmem:[#allocation4 + $0x6c] ss:$16 sps:$4 sm:$0xff]   ;;  %v2994_v19 = vld [vmem:[#allocation4 + $0x60] ss:$16 sps:$4 sm:$0xff]  }
  0x86   : > { %668 = vmatpush1.bf16.msra.mxu0 %v2976_v7  ;;  %781 = vmatpush1.bf16.msra.mxu1 %v2977_v8  ;;  %v2995_v20 = vld [vmem:[#allocation4 + $0x68] ss:$16 sps:$4 sm:$0xff]   ;;  %v2996_v21 = vld [vmem:[#allocation4 + $0x44] ss:$16 sps:$4 sm:$0xff]   ;;  %v2998_v22 = vld [vmem:[#allocation4 + $0x4c] ss:$16 sps:$4 sm:$0xff]  }
  0x87   : > { %669 = vmatprep.subr.bf16.mxu0 %v2978_v9  ;;  %782 = vmatprep.subr.bf16.mxu1 %v2980_v10  ;;  %v3000_v23 = vld [vmem:[#allocation4 + $0x40] ss:$16 sps:$4 sm:$0xff]   ;;  %v3001_v24 = vld [vmem:[#allocation4 + $0x48] ss:$16 sps:$4 sm:$0xff]   ;;  %v3002_v25 = vld [vmem:[#allocation4 + $0x24] ss:$16 sps:$4 sm:$0xff]  }
  0x88   : > { %v3004_v26 = vld [vmem:[#allocation4 + $0x2c] ss:$16 sps:$4 sm:$0xff]   ;;  %v3006_v27 = vld [vmem:[#allocation4 + $0x20] ss:$16 sps:$4 sm:$0xff]   ;;  %v3007_v28 = vld [vmem:[#allocation4 + $0x28] ss:$16 sps:$4 sm:$0xff]  }
  0x89   : > { %v3008_v29 = vld [vmem:[#allocation4 + $0x4] ss:$16 sps:$4 sm:$0xff]   ;;  %v3010_v30 = vld [vmem:[#allocation4 + $0xc] ss:$16 sps:$4 sm:$0xff]   ;;  %v3012_v31 = vld [vmem:[#allocation4] ss:$16 sps:$4 sm:$0xff]  }
  0x8a   : > { %670 = vmatpush1.bf16.msra.mxu0 %v2982_v11  ;;  %783 = vmatpush1.bf16.msra.mxu1 %v2983_v12  ;;  %v3013_v32 = vld [vmem:[#allocation4 + $0x8] ss:$16 sps:$4 sm:$0xff]   ;;  %v427_v33 = vld [vmem:[%s3623_s26] sm:$0xff]  ;;  %v3014_v38 = vld [vmem:[#allocation7 + $0x70] ss:$8 sps:$4 sm:$0xff]   ;;  %s4038_s19 = sadd.s32 4294967295, %s3402_s12  }
  0x8b   : > { %671 = vmatprep.subr.bf16.mxu0 %v2984_v13  ;;  %784 = vmatprep.subr.bf16.mxu1 %v2986_v14  ;;  %v3016_v35 = vld [vmem:[#allocation7 + $0x74] ss:$8 sps:$4 sm:$0xff]   ;;  %v443_v37 = vpack.c.bf16 %v428_v34, %v427_v33  ;;  %v3017_v39 = vld [vmem:[#allocation7 + $0x170] ss:$8 sps:$4 sm:$0xff]   ;;  %v3022_v40 = vld [vmem:[#allocation7 + $0x64] ss:$8 sps:$4 sm:$0xff]  }
  0x8c   : > { %v3019_v36 = vld [vmem:[#allocation7 + $0x174] ss:$8 sps:$4 sm:$0xff]   ;;  %v3025_v41 = vld [vmem:[#allocation7 + $0x164] ss:$8 sps:$4 sm:$0xff]   ;;  %v3020_v44 = vld [vmem:[#allocation7 + $0x60] ss:$8 sps:$4 sm:$0xff]  }
  0x8d   : > { %v429_v42 = vld [vmem:[%s3623_s26 + $0x10] sm:$0xff]  ;;  %v430_v43 = vld [vmem:[%s3623_s26 + $0x18] sm:$0xff]  ;;  %v3023_v45 = vld [vmem:[#allocation7 + $0x160] ss:$8 sps:$4 sm:$0xff]   ;;  %s2551_s30 = sshll.u32 %s4038_s19, 4 }
  0x8e   : > { %672 = vmatpush1.bf16.msra.mxu0 %v2988_v15  ;;  %785 = vmatpush1.bf16.msra.mxu1 %v2989_v16  ;;  %v3028_v46 = vld [vmem:[#allocation7 + $0x54] ss:$8 sps:$4 sm:$0xff]   ;;  %v444_v48 = vpack.c.bf16 %v430_v43, %v429_v42  ;;  %v3026_v49 = vld [vmem:[#allocation7 + $0x50] ss:$8 sps:$4 sm:$0xff]   ;;  %v3034_v51 = vld [vmem:[#allocation7 + $0x44] ss:$8 sps:$4 sm:$0xff]  }
  0x8f   : > { %673 = vmatprep.subr.bf16.mxu0 %v2990_v17  ;;  %786 = vmatprep.subr.bf16.mxu1 %v2992_v18  ;;  %v3031_v47 = vld [vmem:[#allocation7 + $0x154] ss:$8 sps:$4 sm:$0xff]   ;;  %v3029_v50 = vld [vmem:[#allocation7 + $0x150] ss:$8 sps:$4 sm:$0xff]   ;;  %v3037_v52 = vld [vmem:[#allocation7 + $0x144] ss:$8 sps:$4 sm:$0xff]  }
  0x90   : > { %v431_v53 = vld [vmem:[%s3623_s26 + $0x20] sm:$0xff]  ;;  %v432_v54 = vld [vmem:[%s3623_s26 + $0x28] sm:$0xff]  ;;  %v3038_v60 = vld [vmem:[#allocation7 + $0x30] ss:$8 sps:$4 sm:$0xff]   ;;  %p421_p4 = scmp.lt.s32.totalorder %s2551_s30, 31 }
  0x91   : > { %v3032_v55 = vld [vmem:[#allocation7 + $0x40] ss:$8 sps:$4 sm:$0xff]   ;;  %v3040_v57 = vld [vmem:[#allocation7 + $0x34] ss:$8 sps:$4 sm:$0xff]   ;;  %v445_v59 = vpack.c.bf16 %v432_v54, %v431_v53  ;;  %v3041_v61 = vld [vmem:[#allocation7 + $0x130] ss:$8 sps:$4 sm:$0xff]  }
  0x92   : > { %674 = vmatpush1.bf16.msra.mxu0 %v2994_v19  ;;  %787 = vmatpush1.bf16.msra.mxu1 %v2995_v20  ;;  %v3035_v56 = vld [vmem:[#allocation7 + $0x140] ss:$8 sps:$4 sm:$0xff]   ;;  %v3043_v58 = vld [vmem:[#allocation7 + $0x134] ss:$8 sps:$4 sm:$0xff]   ;;  %v3046_v62 = vld [vmem:[#allocation7 + $0x24] ss:$8 sps:$4 sm:$0xff]  }
  0x93   : > { %675 = vmatprep.subr.bf16.mxu0 %v2996_v21  ;;  %788 = vmatprep.subr.bf16.mxu1 %v2998_v22  ;;  %v3049_v63 = vld [vmem:[#allocation7 + $0x124] ss:$8 sps:$4 sm:$0xff]   ;;  %v434_v2 = vld [vmem:[%s3623_s26 + $0x38] sm:$0xff]  ;;  %v3044_v3 = vld [vmem:[#allocation7 + $0x20] ss:$8 sps:$4 sm:$0xff]   ;;  %s4044_s30 = smov (!%p421_p4, %s2551_s30), 31 }
  0x94   : > { %v433_v1 = vld [vmem:[%s3623_s26 + $0x30] sm:$0xff]  ;;  %v3047_v4 = vld [vmem:[#allocation7 + $0x120] ss:$8 sps:$4 sm:$0xff]   ;;  %v3052_v5 = vld [vmem:[#allocation7 + $0x14] ss:$8 sps:$4 sm:$0xff]   ;;  %s2552_s24 = sshll.u32 %s4044_s30, 2 }
  0x95   : > { %v3055_v6 = vld [vmem:[#allocation7 + $0x114] ss:$8 sps:$4 sm:$0xff]   ;;  %v446_v7 = vpack.c.bf16 %v434_v2, %v433_v1  ;;  %v3050_v8 = vld [vmem:[#allocation7 + $0x10] ss:$8 sps:$4 sm:$0xff]   ;;  %v436_v11 = vld [vmem:[%s3623_s26 + $0x48] sm:$0xff]  ;;  %s3973_s12 = scalar_lea.vmem %s4019_s9, %s2552_s24 }
  0x96   : > { %676 = vmatpush1.bf16.msra.mxu0 %v3000_v23  ;;  %789 = vmatpush1.bf16.msra.mxu1 %v3001_v24  ;;  %v3053_v9 = vld [vmem:[#allocation7 + $0x110] ss:$8 sps:$4 sm:$0xff]   ;;  %v435_v10 = vld [vmem:[%s3623_s26 + $0x40] sm:$0xff]  ;;  %v3058_v12 = vld [vmem:[#allocation7 + $0x4] ss:$8 sps:$4 sm:$0xff]  }
  0x97   : > { %677 = vmatprep.subr.bf16.mxu0 %v3002_v25  ;;  %790 = vmatprep.subr.bf16.mxu1 %v3004_v26  ;;  %v3061_v13 = vld [vmem:[#allocation7 + $0x104] ss:$8 sps:$4 sm:$0xff]   ;;  %v3056_v14 = vld [vmem:[#allocation7] ss:$8 sps:$4 sm:$0xff]   ;;  %v3064_v16 = vld [vmem:[#allocation7 + $0xf4] ss:$8 sps:$4 sm:$0xff]   ;;  %v447_v18 = vpack.c.bf16 %v436_v11, %v435_v10 }
  0x98   : > { %v3059_v15 = vld [vmem:[#allocation7 + $0x100] ss:$8 sps:$4 sm:$0xff]   ;;  %v3067_v17 = vld [vmem:[#allocation7 + $0x1f4] ss:$8 sps:$4 sm:$0xff]   ;;  %v3062_v19 = vld [vmem:[#allocation7 + $0xf0] ss:$8 sps:$4 sm:$0xff]  }
  0x99   : > { %v3065_v20 = vld [vmem:[#allocation7 + $0x1f0] ss:$8 sps:$4 sm:$0xff]   ;;  %v3070_v21 = vld [vmem:[#allocation7 + $0xe4] ss:$8 sps:$4 sm:$0xff]   ;;  %v3068_v25 = vld [vmem:[#allocation7 + $0xe0] ss:$8 sps:$4 sm:$0xff]  }
  0x9a   : > { %678 = vmatpush1.bf16.msra.mxu0 %v3006_v27  ;;  %791 = vmatpush1.bf16.msra.mxu1 %v3007_v28  ;;  %v3073_v22 = vld [vmem:[#allocation7 + $0x1e4] ss:$8 sps:$4 sm:$0xff]   ;;  %v438_v24 = vld [vmem:[%s3623_s26 + $0x58] sm:$0xff]  ;;  %v3071_v26 = vld [vmem:[#allocation7 + $0x1e0] ss:$8 sps:$4 sm:$0xff]  }
  0x9b   : > { %679 = vmatprep.subr.bf16.mxu0 %v3008_v29  ;;  %792 = vmatprep.subr.bf16.mxu1 %v3010_v30  ;;  %v437_v23 = vld [vmem:[%s3623_s26 + $0x50] sm:$0xff]  ;;  %v3076_v27 = vld [vmem:[#allocation7 + $0xd4] ss:$8 sps:$4 sm:$0xff]  }
  0x9c   : > { %v3079_v28 = vld [vmem:[#allocation7 + $0x1d4] ss:$8 sps:$4 sm:$0xff]   ;;  %v448_v29 = vpack.c.bf16 %v438_v24, %v437_v23  ;;  %v3074_v30 = vld [vmem:[#allocation7 + $0xd0] ss:$8 sps:$4 sm:$0xff]   ;;  %v3085_v33 = vld [vmem:[#allocation7 + $0x1c4] ss:$8 sps:$4 sm:$0xff]  }
  0x9d   : > { %v439_v34 = vld [vmem:[%s3623_s26 + $0x60] sm:$0xff]  ;;  %v442_v42 = vld [vmem:[%s3623_s26 + $0x78] sm:$0xff]  ;;  %v3106_v53 = vld [vmem:[#allocation7 + $0x84] ss:$8 sps:$4 sm:$0xff]  }
  0x9e   : > { %680 = vmatpush1.bf16.msra.mxu0 %v3012_v31  ;;  %793 = vmatpush1.bf16.msra.mxu1 %v3013_v32  ;;  %v3077_v31 = vld [vmem:[#allocation7 + $0x1d0] ss:$8 sps:$4 sm:$0xff]   ;;  %v3082_v32 = vld [vmem:[#allocation7 + $0xc4] ss:$8 sps:$4 sm:$0xff]  }
  0x9f   : > { %1447 = vmatprep.subr.bf16.mxu0 %v3016_v35  ;;  %1560 = vmatprep.subr.bf16.mxu1 %v3019_v36  ;;  %v440_v35 = vld [vmem:[%s3623_s26 + $0x68] sm:$0xff] }
  0xa0   : > { %v3080_v36 = vld [vmem:[#allocation7 + $0xc0] ss:$8 sps:$4 sm:$0xff]   ;;  %v3109_v54 = vld [vmem:[#allocation7 + $0x184] ss:$8 sps:$4 sm:$0xff]  }
  0xa1   : > { %698 = vmatmul.mubr.bf16.vlgmr.msra.gmra.mxu0 %v443_v37  ;;  %811 = vmatmul.mubr.bf16.vlgmr.msra.gmra.mxu1 %v443_v37  ;;  %v3083_v37 = vld [vmem:[#allocation7 + $0x1c0] ss:$8 sps:$4 sm:$0xff]  }
  0xa2   : > { %707 = vmatprep.mubr.bf16.mxu0 %v3416_v0  ;;  %820 = vmatprep.mubr.bf16.mxu1 %v3416_v0 }
  0xa3   : > { %1448 = vmatpush1.bf16.msra.mxu0 %v3014_v38  ;;  %1561 = vmatpush1.bf16.msra.mxu1 %v3017_v39  ;;  %v3088_v38 = vld [vmem:[#allocation7 + $0xb4] ss:$8 sps:$4 sm:$0xff]   ;;  %v449_v39 = vpack.c.bf16 %v440_v35, %v439_v34 }
  0xa4   : > { %1449 = vmatprep.subr.bf16.mxu0 %v3022_v40  ;;  %1562 = vmatprep.subr.bf16.mxu1 %v3025_v41  ;;  %v3086_v40 = vld [vmem:[#allocation7 + $0xb0] ss:$8 sps:$4 sm:$0xff]  }
  0xa5   : > { %v441_v41 = vld [vmem:[%s3623_s26 + $0x70] sm:$0xff] }
  0xa6   : > { %v450_v43 = vpack.c.bf16 %v442_v42, %v441_v41 }
  0xa7   : > { %1450 = vmatpush1.bf16.msra.mxu0 %v3020_v44  ;;  %1563 = vmatpush1.bf16.msra.mxu1 %v3023_v45  ;;  %v3091_v44 = vld [vmem:[#allocation7 + $0x1b4] ss:$8 sps:$4 sm:$0xff]   ;;  %v3089_v45 = vld [vmem:[#allocation7 + $0x1b0] ss:$8 sps:$4 sm:$0xff]  }
  0xa8   : > { %1451 = vmatprep.subr.bf16.mxu0 %v3028_v46  ;;  %1564 = vmatprep.subr.bf16.mxu1 %v3031_v47  ;;  %v3094_v46 = vld [vmem:[#allocation7 + $0xa4] ss:$8 sps:$4 sm:$0xff]   ;;  %v3092_v47 = vld [vmem:[#allocation7 + $0xa0] ss:$8 sps:$4 sm:$0xff]  }
  0xa9   : > { %708 = vmatmul.mubr.bf16.gmra.mxu0 %v444_v48  ;;  %821 = vmatmul.mubr.bf16.gmra.mxu1 %v444_v48  ;;  %v3097_v48 = vld [vmem:[#allocation7 + $0x1a4] ss:$8 sps:$4 sm:$0xff]  }
  0xaa   : > { %717 = vmatprep.mubr.bf16.mxu0 %v3416_v0  ;;  %830 = vmatprep.mubr.bf16.mxu1 %v3416_v0 }
  0xab   : > { %1452 = vmatpush1.bf16.msra.mxu0 %v3026_v49  ;;  %1565 = vmatpush1.bf16.msra.mxu1 %v3029_v50  ;;  %v3095_v49 = vld [vmem:[#allocation7 + $0x1a0] ss:$8 sps:$4 sm:$0xff]   ;;  %v3100_v50 = vld [vmem:[#allocation7 + $0x94] ss:$8 sps:$4 sm:$0xff]  }
  0xac   : > { %1453 = vmatprep.subr.bf16.mxu0 %v3034_v51  ;;  %1566 = vmatprep.subr.bf16.mxu1 %v3037_v52  ;;  %v3098_v51 = vld [vmem:[#allocation7 + $0x90] ss:$8 sps:$4 sm:$0xff]  }
  0xad   : > { %v3101_v52 = vld [vmem:[#allocation7 + $0x190] ss:$8 sps:$4 sm:$0xff]  }
  0xaf   : > { %1454 = vmatpush1.bf16.msra.mxu0 %v3032_v55  ;;  %1567 = vmatpush1.bf16.msra.mxu1 %v3035_v56  ;;  %v3104_v55 = vld [vmem:[#allocation7 + $0x80] ss:$8 sps:$4 sm:$0xff]  }
  0xb0   : > { %1455 = vmatprep.subr.bf16.mxu0 %v3040_v57  ;;  %1568 = vmatprep.subr.bf16.mxu1 %v3043_v58  ;;  %v3107_v56 = vld [vmem:[#allocation7 + $0x180] ss:$8 sps:$4 sm:$0xff]   ;;  %v3110_v57 = vld [vmem:[#allocation9 + $0x78] sm:$0xff]   ;;  %v485_v58 = vlaneseq }
  0xb1   : > { %718 = vmatmul.mubr.bf16.gmra.mxu0 %v445_v59  ;;  %831 = vmatmul.mubr.bf16.gmra.mxu1 %v445_v59 }
  0xb2   : > { %727 = vmatprep.mubr.bf16.mxu0 %v3416_v0  ;;  %840 = vmatprep.mubr.bf16.mxu1 %v3416_v0  ;;  %v3673_v59 = vshrl.u32 %v485_v58, 7 }
  0xb3   : > { %1456 = vmatpush1.bf16.msra.mxu0 %v3038_v60  ;;  %1569 = vmatpush1.bf16.msra.mxu1 %v3041_v61 }
  0xb4   : > { %1457 = vmatprep.subr.bf16.mxu0 %v3046_v62  ;;  %1570 = vmatprep.subr.bf16.mxu1 %v3049_v63  ;;  %v487_v60 = vsub.s32 0, %v3673_v59  ;;  %v491_v61 = vsub.s32 1, %v3673_v59  ;;  %v483_v62 = vld [vmem:[#allocation6] sm:$0xf]  ;;  %v499_v63 = vsub.s32 3, %v3673_v59  ;;  %v495_v1 = vsub.s32 2, %v3673_v59 }
  0xb6   : > { %v3681_v2 = vrot.slane %v483_v62, %v487_v60 }
  0xb7   : > { %1458 = vmatpush1.bf16.msra.mxu0 %v3044_v3  ;;  %1571 = vmatpush1.bf16.msra.mxu1 %v3047_v4  ;;  %v3685_v3 = vrot.slane %v483_v62, %v491_v61 }
  0xb8   : > { %1459 = vmatprep.subr.bf16.mxu0 %v3052_v5  ;;  %1572 = vmatprep.subr.bf16.mxu1 %v3055_v6  ;;  %v3687_v6 = vrot.slane %v483_v62, %v499_v63  ;;  %v3112_v63 = vld [vmem:[#allocation9 + $0x70] sm:$0xff]  }
  0xb9   : > { %728 = vmatmul.mubr.bf16.gmra.mxu0 %v446_v7  ;;  %841 = vmatmul.mubr.bf16.gmra.mxu1 %v446_v7  ;;  %v3689_v7 = vrot.slane %v483_v62, %v495_v1 }
  0xba   : > { %737 = vmatprep.mubr.bf16.mxu0 %v3416_v0  ;;  %850 = vmatprep.mubr.bf16.mxu1 %v3416_v0 }
  0xbb   : > { %1460 = vmatpush1.bf16.msra.mxu0 %v3050_v8  ;;  %1573 = vmatpush1.bf16.msra.mxu1 %v3053_v9 }
  0xbc   : > { %1461 = vmatprep.subr.bf16.mxu0 %v3058_v12  ;;  %1574 = vmatprep.subr.bf16.mxu1 %v3061_v13 }
  0xbf   : > { %1462 = vmatpush1.bf16.msra.mxu0 %v3056_v14  ;;  %1575 = vmatpush1.bf16.msra.mxu1 %v3059_v15 }
  0xc0   : > { %1463 = vmatprep.subr.bf16.mxu0 %v3064_v16  ;;  %1576 = vmatprep.subr.bf16.mxu1 %v3067_v17 }
  0xc1   : > { %738 = vmatmul.mubr.bf16.gmra.mxu0 %v447_v18  ;;  %851 = vmatmul.mubr.bf16.gmra.mxu1 %v447_v18 }
  0xc2   : > { %747 = vmatprep.mubr.bf16.mxu0 %v3416_v0  ;;  %860 = vmatprep.mubr.bf16.mxu1 %v3416_v0 }
  0xc3   : > { %1464 = vmatpush2.bf16.msra.mxu0 %v3062_v19  ;;  %1577 = vmatpush2.bf16.msra.mxu1 %v3065_v20 }
  0xc4   : > { %1465 = vmatprep.subr.bf16.mxu0 %v3070_v21  ;;  %1578 = vmatprep.subr.bf16.mxu1 %v3073_v22 }
  0xc7   : > { %1466 = vmatpush2.bf16.msra.mxu0 %v3068_v25  ;;  %1579 = vmatpush2.bf16.msra.mxu1 %v3071_v26 }
  0xc8   : > { %1467 = vmatprep.subr.bf16.mxu0 %v3076_v27  ;;  %1580 = vmatprep.subr.bf16.mxu1 %v3079_v28 }
  0xc9   : > { %748 = vmatmul.mubr.bf16.gmra.mxu0 %v448_v29  ;;  %861 = vmatmul.mubr.bf16.gmra.mxu1 %v448_v29 }
  0xca   : > { %757 = vmatprep.mubr.bf16.mxu0 %v3416_v0  ;;  %870 = vmatprep.mubr.bf16.mxu1 %v3416_v0 }
  0xcb   : > { %1468 = vmatpush2.bf16.msra.mxu0 %v3074_v30  ;;  %1581 = vmatpush2.bf16.msra.mxu1 %v3077_v31 }
  0xcc   : > { %1469 = vmatprep.subr.bf16.mxu0 %v3082_v32  ;;  %1582 = vmatprep.subr.bf16.mxu1 %v3085_v33 }
  0xcf   : > { %1470 = vmatpush2.bf16.msra.mxu0 %v3080_v36  ;;  %1583 = vmatpush2.bf16.msra.mxu1 %v3083_v37 }
  0xd0   : > { %1471 = vmatprep.subr.bf16.mxu0 %v3088_v38  ;;  %1584 = vmatprep.subr.bf16.mxu1 %v3091_v44 }
  0xd1   : > { %758 = vmatmul.mubr.bf16.gmra.mxu0 %v449_v39  ;;  %871 = vmatmul.mubr.bf16.gmra.mxu1 %v449_v39 }
  0xd2   : > { %767 = vmatprep.mubr.bf16.mxu0 %v3416_v0  ;;  %880 = vmatprep.mubr.bf16.mxu1 %v3416_v0  ;;  %v3103_v0 = vld [vmem:[#allocation7 + $0x194] ss:$8 sps:$4 sm:$0xff]  }
  0xd3   : > { %1472 = vmatpush2.bf16.msra.mxu0 %v3086_v40  ;;  %1585 = vmatpush2.bf16.msra.mxu1 %v3089_v45 }
  0xd4   : > { %1473 = vmatprep.subr.bf16.mxu0 %v3094_v46  ;;  %1586 = vmatprep.subr.bf16.mxu1 %v3097_v48 }
  0xd7   : > { %1474 = vmatpush2.bf16.msra.mxu0 %v3092_v47  ;;  %1587 = vmatpush2.bf16.msra.mxu1 %v3095_v49 }
  0xd8   : > { %1475 = vmatprep.subr.bf16.mxu0 %v3100_v50  ;;  %1588 = vmatprep.subr.bf16.mxu1 %v3103_v0 }
  0xd9   : > { %768 = vmatmul.mubr.bf16.gmra.mxu0 %v450_v43  ;;  %881 = vmatmul.mubr.bf16.gmra.mxu1 %v450_v43 }
  0xdb   : > { %1476 = vmatpush2.bf16.msra.mxu0 %v3098_v51  ;;  %1589 = vmatpush2.bf16.msra.mxu1 %v3101_v52 }
  0xdc   : > { %1477 = vmatprep.subr.bf16.mxu0 %v3106_v53  ;;  %1590 = vmatprep.subr.bf16.mxu1 %v3109_v54 }
  0xdf   : > { %1478 = vmatpush2.bf16.msra.mxu0 %v3104_v55  ;;  %1591 = vmatpush2.bf16.msra.mxu1 %v3107_v56  ;;  %v3111_v55 = vld [vmem:[#allocation9 + $0x38] sm:$0xff]  }
  0xe0   : > { %2757 = vmatprep.subr.bf16.mxu0 %v3110_v57 }
 0x161   : > { %v699_v4 = vpop.f32.mrf.mxu0  ;;  %v812_v5 = vpop.f32.mrf.mxu1 }
 0x162   : > { %v700_v10 = vadd.f32 %v699_v4, %v3681_v2  ;;  %v813_v15 = vadd.f32 %v812_v5, %v3689_v7 }
 0x163   : > { %v701_v8 = vpop.f32.mrf.mxu0  ;;  %v814_v9 = vpop.f32.mrf.mxu1 }
 0x164   : > { %v702_v11 = vadd.f32 %v701_v8, %v3685_v3  ;;  %v815_v12 = vadd.f32 %v814_v9, %v3687_v6  ;;  %v891_v20 = vmul.f32 0.01, %v700_v10  ;;  %v893_v29 = vmul.f32 0.01, %v813_v15 }
 0x165   : > { %v703_v13 = vpop.f32.mrf.mxu0  ;;  %v816_v14 = vpop.f32.mrf.mxu1 }
 0x166   : > { %v704_v16 = vadd.f32 %v703_v13, %v3681_v2  ;;  %v817_v17 = vadd.f32 %v816_v14, %v3689_v7  ;;  %v892_v21 = vmul.f32 0.01, %v702_v11  ;;  %v894_v24 = vmul.f32 0.01, %v815_v12 }
 0x167   : > { %v705_v18 = vpop.f32.mrf.mxu0  ;;  %v818_v19 = vpop.f32.mrf.mxu1  ;;  %v955_v36 = vmax.f32 %v700_v10, %v891_v20  ;;  %v957_v46 = vmax.f32 %v813_v15, %v893_v29 }
 0x168   : > { %v706_v22 = vadd.f32 %v705_v18, %v3685_v3  ;;  %v819_v23 = vadd.f32 %v818_v19, %v3687_v6  ;;  %v895_v25 = vmul.f32 0.01, %v704_v16  ;;  %v897_v26 = vmul.f32 0.01, %v817_v17 }
 0x169   : > { %v709_v27 = vpop.f32.mrf.mxu0  ;;  %v822_v28 = vpop.f32.mrf.mxu1  ;;  %v956_v40 = vmax.f32 %v702_v11, %v892_v21  ;;  %v958_v41 = vmax.f32 %v815_v12, %v894_v24  ;;  %v3114_v21 = vld [vmem:[#allocation9 + $0x68] sm:$0xff]  }
 0x16a   : > { %v896_v30 = vmul.f32 0.01, %v706_v22  ;;  %v898_v31 = vmul.f32 0.01, %v819_v23  ;;  %v959_v32 = vmax.f32 %v704_v16, %v895_v25  ;;  %v3700_v33 = vadd.f32 %v709_v27, %v3681_v2  ;;  %v3113_v16 = vld [vmem:[#allocation9 + $0x30] sm:$0xff]  }
 0x16b   : > { %v711_v34 = vpop.f32.mrf.mxu0  ;;  %v824_v35 = vpop.f32.mrf.mxu1  ;;  %v961_v37 = vmax.f32 %v817_v17, %v897_v26  ;;  %v3705_v47 = vadd.f32 %v822_v28, %v3689_v7 }
 0x16c   : > { %v960_v38 = vmax.f32 %v706_v22, %v896_v30  ;;  %v962_v39 = vmax.f32 %v819_v23, %v898_v31  ;;  %v712_v42 = vadd.f32 %v711_v34, %v3685_v3  ;;  %v825_v43 = vadd.f32 %v824_v35, %v3687_v6 }
 0x16d   : > { %v713_v44 = vpop.f32.mrf.mxu0  ;;  %v826_v45 = vpop.f32.mrf.mxu1  ;;  %v1019_v50 = vpack.c.bf16 %v959_v32, %v955_v36  ;;  %v899_v0 = vmul.f32 0.01, %v3700_v33  ;;  %v1021_v56 = vpack.c.bf16 %v961_v37, %v957_v46  ;;  %v901_v12 = vmul.f32 0.01, %v3705_v47  ;;  %v3115_v37 = vld [vmem:[#allocation9 + $0x28] sm:$0xff]  }
 0x16e   : > { %v714_v48 = vadd.f32 %v713_v44, %v3681_v2  ;;  %v3709_v49 = vadd.f32 %v826_v45, %v3689_v7  ;;  %v1020_v53 = vpack.c.bf16 %v960_v38, %v956_v40  ;;  %v1022_v54 = vpack.c.bf16 %v962_v39, %v958_v41  ;;  %v3116_v38 = vld [vmem:[#allocation9 + $0x60] sm:$0xff]  }
 0x16f   : > { %v715_v51 = vpop.f32.mrf.mxu0  ;;  %v828_v52 = vpop.f32.mrf.mxu1  ;;  %v900_v1 = vmul.f32 0.01, %v712_v42  ;;  %v902_v4 = vmul.f32 0.01, %v825_v43  ;;  %v963_v22 = vmax.f32 %v3700_v33, %v899_v0  ;;  %v965_v32 = vmax.f32 %v3705_v47, %v901_v12 }
 0x170   : > { %v903_v57 = vmul.f32 0.01, %v714_v48  ;;  %v716_v58 = vadd.f32 %v715_v51, %v3685_v3  ;;  %v829_v62 = vadd.f32 %v828_v52, %v3687_v6  ;;  %v905_v5 = vmul.f32 0.01, %v3709_v49  ;;  %1479 = vmatprep.mubr.bf16.mxu0 %v1020_v53  ;;  %1592 = vmatprep.mubr.bf16.mxu1 %v1022_v54 }
 0x171   : > { %v719_v8 = vpop.f32.mrf.mxu0  ;;  %v832_v9 = vpop.f32.mrf.mxu1  ;;  %1480 = vmatmul.mubr.bf16.vlgmr.msra.gmra.mxu0 %v1019_v50  ;;  %1593 = vmatmul.mubr.bf16.vlgmr.msra.gmra.mxu1 %v1021_v56  ;;  %v964_v23 = vmax.f32 %v712_v42, %v900_v1  ;;  %v966_v24 = vmax.f32 %v825_v43, %v902_v4 }
 0x172   : > { %v904_v10 = vmul.f32 0.01, %v716_v58  ;;  %v906_v11 = vmul.f32 0.01, %v829_v62  ;;  %v967_v13 = vmax.f32 %v714_v48, %v903_v57  ;;  %2758 = vmatpush3.bf16.msra.mxu0 %v3111_v55  ;;  %v969_v25 = vmax.f32 %v3709_v49, %v905_v5  ;;  %v3117_v55 = vld [vmem:[#allocation9 + $0x20] sm:$0xff]  }
 0x173   : > { %v721_v14 = vpop.f32.mrf.mxu0  ;;  %v834_v15 = vpop.f32.mrf.mxu1  ;;  %2759 = vmatprep.subr.bf16.mxu0 %v3112_v63  ;;  %v3725_v28 = vadd.f32 %v719_v8, %v3681_v2  ;;  %v3728_v29 = vadd.f32 %v832_v9, %v3689_v7  ;;  %v3118_v63 = vld [vmem:[#allocation9 + $0x58] sm:$0xff]  }
 0x174   : > { %v968_v17 = vmax.f32 %v716_v58, %v904_v10  ;;  %v970_v18 = vmax.f32 %v829_v62, %v906_v11  ;;  %v3717_v19 = vadd.f32 %v721_v14, %v3685_v3  ;;  %v3720_v20 = vadd.f32 %v834_v15, %v3687_v6 }
 0x175   : > { %v723_v26 = vpop.f32.mrf.mxu0  ;;  %v836_v27 = vpop.f32.mrf.mxu1  ;;  %v1023_v42 = vpack.c.bf16 %v967_v13, %v963_v22  ;;  %v1025_v48 = vpack.c.bf16 %v969_v25, %v965_v32  ;;  %v907_v49 = vmul.f32 0.01, %v3725_v28  ;;  %v909_v50 = vmul.f32 0.01, %v3728_v29 }
 0x176   : > { %v724_v30 = vadd.f32 %v723_v26, %v3681_v2  ;;  %v3732_v31 = vadd.f32 %v836_v27, %v3689_v7  ;;  %v1024_v35 = vpack.c.bf16 %v968_v17, %v964_v23  ;;  %v1026_v36 = vpack.c.bf16 %v970_v18, %v966_v24  ;;  %2760 = vmatpush3.bf16.msra.mxu0 %v3113_v16  ;;  %v3120_v26 = vld [vmem:[#allocation9 + $0x50] sm:$0xff]  }
 0x177   : > { %v725_v33 = vpop.f32.mrf.mxu0  ;;  %v838_v34 = vpop.f32.mrf.mxu1  ;;  %v908_v39 = vmul.f32 0.01, %v3717_v19  ;;  %v910_v40 = vmul.f32 0.01, %v3720_v20  ;;  %2761 = vmatprep.subr.bf16.mxu0 %v3114_v21  ;;  %v971_v11 = vmax.f32 %v3725_v28, %v907_v49  ;;  %v973_v12 = vmax.f32 %v3728_v29, %v909_v50  ;;  %v3119_v21 = vld [vmem:[#allocation9 + $0x18] sm:$0xff]  }
 0x178   : > { %v911_v41 = vmul.f32 0.01, %v724_v30  ;;  %v913_v43 = vmul.f32 0.01, %v3732_v31  ;;  %v726_v44 = vadd.f32 %v725_v33, %v3685_v3  ;;  %v839_v45 = vadd.f32 %v838_v34, %v3687_v6  ;;  %1489 = vmatprep.mubr.bf16.mxu0 %v1024_v35  ;;  %1602 = vmatprep.mubr.bf16.mxu1 %v1026_v36 }
 0x179   : > { %v729_v46 = vpop.f32.mrf.mxu0  ;;  %v842_v47 = vpop.f32.mrf.mxu1  ;;  %1490 = vmatmul.mubr.bf16.gmra.mxu0 %v1023_v42  ;;  %1603 = vmatmul.mubr.bf16.gmra.mxu1 %v1025_v48  ;;  %v972_v56 = vmax.f32 %v3717_v19, %v908_v39  ;;  %v974_v57 = vmax.f32 %v3720_v20, %v910_v40  ;;  %v3121_v39 = vld [vmem:[#allocation9 + $0x10] sm:$0xff]  }
 0x17a   : > { %v3743_v0 = vadd.f32 %v729_v46, %v3681_v2  ;;  %v912_v51 = vmul.f32 0.01, %v726_v44  ;;  %v914_v52 = vmul.f32 0.01, %v839_v45  ;;  %2762 = vmatpush3.bf16.msra.mxu0 %v3115_v37  ;;  %v975_v58 = vmax.f32 %v724_v30, %v911_v41 }
 0x17b   : > { %v731_v53 = vpop.f32.mrf.mxu0  ;;  %v844_v54 = vpop.f32.mrf.mxu1  ;;  %2763 = vmatprep.subr.bf16.mxu0 %v3116_v38  ;;  %v977_v1 = vmax.f32 %v3732_v31, %v913_v43  ;;  %v3756_v14 = vadd.f32 %v842_v47, %v3689_v7 }
 0x17c   : > { %v3748_v62 = vadd.f32 %v731_v53, %v3685_v3  ;;  %v976_v4 = vmax.f32 %v726_v44, %v912_v51  ;;  %v978_v5 = vmax.f32 %v839_v45, %v914_v52  ;;  %v845_v8 = vadd.f32 %v844_v54, %v3687_v6 }
 0x17d   : > { %v733_v9 = vpop.f32.mrf.mxu0  ;;  %v846_v10 = vpop.f32.mrf.mxu1  ;;  %v915_v13 = vmul.f32 0.01, %v3743_v0  ;;  %v1027_v25 = vpack.c.bf16 %v975_v58, %v971_v11  ;;  %v1029_v32 = vpack.c.bf16 %v977_v1, %v973_v12  ;;  %v917_v33 = vmul.f32 0.01, %v3756_v14 }
 0x17e   : > { %v734_v15 = vadd.f32 %v733_v9, %v3681_v2  ;;  %v3760_v16 = vadd.f32 %v846_v10, %v3689_v7  ;;  %v1028_v19 = vpack.c.bf16 %v976_v4, %v972_v56  ;;  %v1030_v20 = vpack.c.bf16 %v978_v5, %v974_v57  ;;  %2764 = vmatpush3.bf16.msra.mxu0 %v3117_v55 }
 0x17f   : > { %v735_v17 = vpop.f32.mrf.mxu0  ;;  %v848_v18 = vpop.f32.mrf.mxu1  ;;  %v916_v22 = vmul.f32 0.01, %v3748_v62  ;;  %2765 = vmatprep.subr.bf16.mxu0 %v3118_v63  ;;  %v918_v27 = vmul.f32 0.01, %v845_v8  ;;  %v979_v50 = vmax.f32 %v3743_v0, %v915_v13  ;;  %v981_v51 = vmax.f32 %v3756_v14, %v917_v33 }
 0x180   : > { %v736_v23 = vadd.f32 %v735_v17, %v3685_v3  ;;  %v849_v24 = vadd.f32 %v848_v18, %v3687_v6  ;;  %v919_v28 = vmul.f32 0.01, %v734_v15  ;;  %v921_v29 = vmul.f32 0.01, %v3760_v16  ;;  %1499 = vmatprep.mubr.bf16.mxu0 %v1028_v19  ;;  %1612 = vmatprep.mubr.bf16.mxu1 %v1030_v20 }
 0x181   : > { %v739_v30 = vpop.f32.mrf.mxu0  ;;  %v852_v31 = vpop.f32.mrf.mxu1  ;;  %1500 = vmatmul.mubr.bf16.gmra.mxu0 %v1027_v25  ;;  %1613 = vmatmul.mubr.bf16.gmra.mxu1 %v1029_v32  ;;  %v980_v40 = vmax.f32 %v3748_v62, %v916_v22  ;;  %v982_v44 = vmax.f32 %v845_v8, %v918_v27 }
 0x182   : > { %v920_v34 = vmul.f32 0.01, %v736_v23  ;;  %v922_v35 = vmul.f32 0.01, %v849_v24  ;;  %v3768_v36 = vadd.f32 %v739_v30, %v3681_v2  ;;  %2766 = vmatpush3.bf16.msra.mxu0 %v3119_v21  ;;  %v983_v41 = vmax.f32 %v734_v15, %v919_v28 }
 0x183   : > { %v741_v37 = vpop.f32.mrf.mxu0  ;;  %v854_v38 = vpop.f32.mrf.mxu1  ;;  %2767 = vmatprep.subr.bf16.mxu0 %v3120_v26  ;;  %v985_v45 = vmax.f32 %v3760_v16, %v921_v29  ;;  %v853_v55 = vadd.f32 %v852_v31, %v3689_v7 }
 0x184   : > { %v984_v42 = vmax.f32 %v736_v23, %v920_v34  ;;  %v986_v43 = vmax.f32 %v849_v24, %v922_v35  ;;  %v742_v46 = vadd.f32 %v741_v37, %v3685_v3  ;;  %v855_v47 = vadd.f32 %v854_v38, %v3687_v6 }
 0x185   : > { %v743_v48 = vpop.f32.mrf.mxu0  ;;  %v856_v49 = vpop.f32.mrf.mxu1  ;;  %v923_v54 = vmul.f32 0.01, %v3768_v36  ;;  %v1031_v4 = vpack.c.bf16 %v983_v41, %v979_v50  ;;  %v1033_v12 = vpack.c.bf16 %v985_v45, %v981_v51  ;;  %v925_v15 = vmul.f32 0.01, %v853_v55 }
 0x186   : > { %v744_v52 = vadd.f32 %v743_v48, %v3681_v2  ;;  %v857_v53 = vadd.f32 %v856_v49, %v3689_v7  ;;  %v1032_v58 = vpack.c.bf16 %v984_v42, %v980_v40  ;;  %v1034_v62 = vpack.c.bf16 %v986_v43, %v982_v44  ;;  %2768 = vmatpush3.bf16.msra.mxu0 %v3121_v39 }
 0x187   : > { %v745_v56 = vpop.f32.mrf.mxu0  ;;  %v858_v57 = vpop.f32.mrf.mxu1  ;;  %v924_v5 = vmul.f32 0.01, %v742_v46  ;;  %v926_v8 = vmul.f32 0.01, %v855_v47  ;;  %v987_v23 = vmax.f32 %v3768_v36, %v923_v54  ;;  %v989_v33 = vmax.f32 %v853_v55, %v925_v15 }
 0x188   : > { %v927_v63 = vmul.f32 0.01, %v744_v52  ;;  %v746_v1 = vadd.f32 %v745_v56, %v3685_v3  ;;  %v859_v0 = vadd.f32 %v858_v57, %v3687_v6  ;;  %v929_v9 = vmul.f32 0.01, %v857_v53  ;;  %1509 = vmatprep.mubr.bf16.mxu0 %v1032_v58  ;;  %1622 = vmatprep.mubr.bf16.mxu1 %v1034_v62 }
 0x189   : > { %v749_v10 = vpop.f32.mrf.mxu0  ;;  %v862_v11 = vpop.f32.mrf.mxu1  ;;  %1510 = vmatmul.mubr.bf16.gmra.mxu0 %v1031_v4  ;;  %1623 = vmatmul.mubr.bf16.gmra.mxu1 %v1033_v12  ;;  %v988_v24 = vmax.f32 %v742_v46, %v924_v5  ;;  %v990_v25 = vmax.f32 %v855_v47, %v926_v8 }
 0x18a   : > { %v928_v13 = vmul.f32 0.01, %v746_v1  ;;  %v930_v14 = vmul.f32 0.01, %v859_v0  ;;  %v991_v16 = vmax.f32 %v744_v52, %v927_v63  ;;  %v993_v26 = vmax.f32 %v857_v53, %v929_v9 }
 0x18b   : > { %v751_v17 = vpop.f32.mrf.mxu0  ;;  %v864_v18 = vpop.f32.mrf.mxu1  ;;  %v750_v29 = vadd.f32 %v749_v10, %v3681_v2  ;;  %v863_v30 = vadd.f32 %v862_v11, %v3689_v7 }
 0x18c   : > { %v992_v19 = vmax.f32 %v746_v1, %v928_v13  ;;  %v994_v20 = vmax.f32 %v859_v0, %v930_v14  ;;  %v752_v21 = vadd.f32 %v751_v17, %v3685_v3  ;;  %v865_v22 = vadd.f32 %v864_v18, %v3687_v6 }
 0x18d   : > { %v753_v27 = vpop.f32.mrf.mxu0  ;;  %v866_v28 = vpop.f32.mrf.mxu1  ;;  %v1035_v41 = vpack.c.bf16 %v991_v16, %v987_v23  ;;  %v1037_v47 = vpack.c.bf16 %v993_v26, %v989_v33  ;;  %v931_v48 = vmul.f32 0.01, %v750_v29  ;;  %v933_v49 = vmul.f32 0.01, %v863_v30 }
 0x18e   : > { %v754_v31 = vadd.f32 %v753_v27, %v3681_v2  ;;  %v867_v32 = vadd.f32 %v866_v28, %v3689_v7  ;;  %v1036_v37 = vpack.c.bf16 %v992_v19, %v988_v24  ;;  %v1038_v38 = vpack.c.bf16 %v994_v20, %v990_v25 }
 0x18f   : > { %v755_v34 = vpop.f32.mrf.mxu0  ;;  %v868_v35 = vpop.f32.mrf.mxu1  ;;  %v932_v39 = vmul.f32 0.01, %v752_v21  ;;  %v934_v36 = vmul.f32 0.01, %v865_v22  ;;  %v995_v9 = vmax.f32 %v750_v29, %v931_v48  ;;  %v997_v10 = vmax.f32 %v863_v30, %v933_v49 }
 0x190   : > { %v935_v40 = vmul.f32 0.01, %v754_v31  ;;  %v937_v42 = vmul.f32 0.01, %v867_v32  ;;  %v756_v43 = vadd.f32 %v755_v34, %v3685_v3  ;;  %v869_v44 = vadd.f32 %v868_v35, %v3687_v6  ;;  %1519 = vmatprep.mubr.bf16.mxu0 %v1036_v37  ;;  %1632 = vmatprep.mubr.bf16.mxu1 %v1038_v38 }
 0x191   : > { %v759_v45 = vpop.f32.mrf.mxu0  ;;  %v872_v46 = vpop.f32.mrf.mxu1  ;;  %1520 = vmatmul.mubr.bf16.gmra.mxu0 %v1035_v41  ;;  %1633 = vmatmul.mubr.bf16.gmra.mxu1 %v1037_v47  ;;  %v996_v56 = vmax.f32 %v752_v21, %v932_v39  ;;  %v998_v57 = vmax.f32 %v865_v22, %v934_v36 }
 0x192   : > { %v3792_v50 = vadd.f32 %v759_v45, %v3681_v2  ;;  %v3795_v51 = vadd.f32 %v872_v46, %v3689_v7  ;;  %v936_v52 = vmul.f32 0.01, %v756_v43  ;;  %v938_v53 = vmul.f32 0.01, %v869_v44 }
 0x193   : > { %v761_v54 = vpop.f32.mrf.mxu0  ;;  %v874_v55 = vpop.f32.mrf.mxu1  ;;  %v999_v58 = vmax.f32 %v754_v31, %v935_v40  ;;  %v1001_v63 = vmax.f32 %v867_v32, %v937_v42 }
 0x194   : > { %v762_v62 = vadd.f32 %v761_v54, %v3685_v3  ;;  %v1000_v1 = vmax.f32 %v756_v43, %v936_v52  ;;  %v1002_v0 = vmax.f32 %v869_v44, %v938_v53  ;;  %v875_v4 = vadd.f32 %v874_v55, %v3687_v6 }
 0x195   : > { %v763_v5 = vpop.f32.mrf.mxu0  ;;  %v876_v8 = vpop.f32.mrf.mxu1  ;;  %v939_v11 = vmul.f32 0.01, %v3792_v50  ;;  %v941_v12 = vmul.f32 0.01, %v3795_v51  ;;  %v1039_v22 = vpack.c.bf16 %v999_v58, %v995_v9  ;;  %v1041_v28 = vpack.c.bf16 %v1001_v63, %v997_v10 }
 0x196   : > { %v764_v13 = vadd.f32 %v763_v5, %v3681_v2  ;;  %v877_v14 = vadd.f32 %v876_v8, %v3689_v7  ;;  %v1040_v17 = vpack.c.bf16 %v1000_v1, %v996_v56  ;;  %v1042_v18 = vpack.c.bf16 %v1002_v0, %v998_v57 }
 0x197   : > { %v765_v15 = vpop.f32.mrf.mxu0  ;;  %v878_v16 = vpop.f32.mrf.mxu1  ;;  %v940_v19 = vmul.f32 0.01, %v762_v62  ;;  %v942_v23 = vmul.f32 0.01, %v875_v4  ;;  %v1003_v31 = vmax.f32 %v3792_v50, %v939_v11  ;;  %v1005_v35 = vmax.f32 %v3795_v51, %v941_v12 }
 0x198   : > { %v766_v20 = vadd.f32 %v765_v15, %v3685_v3  ;;  %v879_v21 = vadd.f32 %v878_v16, %v3687_v6  ;;  %v943_v24 = vmul.f32 0.01, %v764_v13  ;;  %v945_v25 = vmul.f32 0.01, %v877_v14  ;;  %1529 = vmatprep.mubr.bf16.mxu0 %v1040_v17  ;;  %1642 = vmatprep.mubr.bf16.mxu1 %v1042_v18  ;;  %v3122_v16 = vld [vmem:[#allocation9 + $0x48] sm:$0xff]   ;;  %v3124_v18 = vld [vmem:[#allocation9 + $0x40] sm:$0xff]  }
 0x199   : > { %v769_v26 = vpop.f32.mrf.mxu0  ;;  %v882_v27 = vpop.f32.mrf.mxu1  ;;  %1530 = vmatmul.mubr.bf16.gmra.mxu0 %v1039_v22  ;;  %1643 = vmatmul.mubr.bf16.gmra.mxu1 %v1041_v28  ;;  %v1004_v37 = vmax.f32 %v762_v62, %v940_v19  ;;  %v1006_v36 = vmax.f32 %v875_v4, %v942_v23  ;;  %v3123_v17 = vld [vmem:[#allocation9 + $0x8] sm:$0xff]   ;;  %v3125_v19 = vld [vmem:[#allocation9] sm:$0xff]   ;;  %v1115_v22 = vld [vmem:[%s4014_s4] sm:$0x3] }
 0x19a   : > { %v944_v29 = vmul.f32 0.01, %v766_v20  ;;  %v946_v30 = vmul.f32 0.01, %v879_v21  ;;  %v1007_v32 = vmax.f32 %v764_v13, %v943_v24  ;;  %v1009_v40 = vmax.f32 %v877_v14, %v945_v25  ;;  %2769 = vmatprep.subr.bf16.mxu0 %v3122_v16 }
 0x19b   : > { %v771_v33 = vpop.f32.mrf.mxu0  ;;  %v884_v34 = vpop.f32.mrf.mxu1  ;;  %v770_v45 = vadd.f32 %v769_v26, %v3681_v2  ;;  %v883_v46 = vadd.f32 %v882_v27, %v3689_v7  ;;  %2770 = vmatpush3.bf16.msra.mxu0 %v3123_v17  ;;  %v3820_v23 = vrot.slane %v1115_v22, %v487_v60  ;;  %v3824_v24 = vrot.slane %v1115_v22, %v491_v61 }
 0x19c   : > { %v1008_v38 = vmax.f32 %v766_v20, %v944_v29  ;;  %v1010_v39 = vmax.f32 %v879_v21, %v946_v30  ;;  %v772_v41 = vadd.f32 %v771_v33, %v3685_v3  ;;  %v885_v42 = vadd.f32 %v884_v34, %v3687_v6  ;;  %2771 = vmatprep.subr.bf16.mxu0 %v3124_v18  ;;  %v3126_v20 = vld [vmem:[#allocation10 + $0x38] sm:$0xff]   ;;  %v3127_v21 = vld [vmem:[#allocation10 + $0x30] sm:$0xff]  }
 0x19d   : > { %v773_v43 = vpop.f32.mrf.mxu0  ;;  %v886_v44 = vpop.f32.mrf.mxu1  ;;  %v1043_v54 = vpack.c.bf16 %v1007_v32, %v1003_v31  ;;  %v1045_v63 = vpack.c.bf16 %v1009_v40, %v1005_v35  ;;  %v947_v1 = vmul.f32 0.01, %v770_v45  ;;  %2837 = vmatprep.subr.bf16.mxu1 %v3126_v20 }
 0x19e   : > { %v774_v47 = vadd.f32 %v773_v43, %v3681_v2  ;;  %v887_v48 = vadd.f32 %v886_v44, %v3689_v7  ;;  %v948_v49 = vmul.f32 0.01, %v772_v41  ;;  %v1044_v52 = vpack.c.bf16 %v1008_v38, %v1004_v37  ;;  %2838 = vmatpush3.bf16.msra.mxu1 %v3126_v20 }
 0x19f   : > { %v775_v50 = vpop.f32.mrf.mxu0  ;;  %v888_v51 = vpop.f32.mrf.mxu1  ;;  %v1046_v53 = vpack.c.bf16 %v1010_v39, %v1006_v36  ;;  %v950_v55 = vmul.f32 0.01, %v885_v42  ;;  %v949_v7 = vmul.f32 0.01, %v883_v46  ;;  %v1011_v12 = vmax.f32 %v770_v45, %v947_v1  ;;  %2772 = vmatpush3.bf16.msra.mxu0 %v3125_v19  ;;  %2839 = vmatprep.subr.bf16.mxu1 %v3127_v21 }
 0x1a0   : > { %v951_v56 = vmul.f32 0.01, %v774_v47  ;;  %v776_v57 = vadd.f32 %v775_v50, %v3685_v3  ;;  %v889_v58 = vadd.f32 %v888_v51, %v3687_v6  ;;  %v953_v62 = vmul.f32 0.01, %v887_v48  ;;  %1539 = vmatprep.mubr.bf16.mxu0 %v1044_v52 }
 0x1a1   : > { %1652 = vmatprep.mubr.bf16.mxu1 %v1046_v53  ;;  %1540 = vmatmul.mubr.bf16.gmra.mxu0 %v1043_v54  ;;  %v1012_v4 = vmax.f32 %v772_v41, %v948_v49  ;;  %v1014_v5 = vmax.f32 %v885_v42, %v950_v55  ;;  %v1013_v6 = vmax.f32 %v883_v46, %v949_v7 }
 0x1a2   : > { %v952_v2 = vmul.f32 0.01, %v776_v57  ;;  %v954_v0 = vmul.f32 0.01, %v889_v58  ;;  %1653 = vmatmul.mubr.bf16.gmra.mxu1 %v1045_v63  ;;  %v1015_v8 = vmax.f32 %v774_v47, %v951_v56  ;;  %v1017_v11 = vmax.f32 %v887_v48, %v953_v62 }
 0x1a3   : > { %2840 = vmatpush3.bf16.msra.mxu1 %v3127_v21 }
 0x1a4   : > { %v1016_v9 = vmax.f32 %v776_v57, %v952_v2  ;;  %v1018_v10 = vmax.f32 %v889_v58, %v954_v0  ;;  %v1047_v14 = vpack.c.bf16 %v1015_v8, %v1011_v12  ;;  %v1049_v15 = vpack.c.bf16 %v1017_v11, %v1013_v6 }
 0x1a6   : > { %v1048_v3 = vpack.c.bf16 %v1016_v9, %v1012_v4  ;;  %v1050_v13 = vpack.c.bf16 %v1018_v10, %v1014_v5 }
 0x1a8   : > { %1549 = vmatprep.mubr.bf16.mxu0 %v1048_v3  ;;  %1662 = vmatprep.mubr.bf16.mxu1 %v1050_v13 }
 0x1a9   : > { %1550 = vmatmul.mubr.bf16.gmra.mxu0 %v1047_v14 }
 0x1aa   : > { %1663 = vmatmul.mubr.bf16.gmra.mxu1 %v1049_v15 }
 0x231   : > { %v1481_v25 = vpop.f32.mrf.mxu0  ;;  %v1594_v26 = vpop.f32.mrf.mxu1 }
 0x232   : > { %v1482_v27 = vadd.f32 %v1481_v25, %v3820_v23 }
 0x233   : > { %v1483_v28 = vpop.f32.mrf.mxu0  ;;  %v1596_v29 = vpop.f32.mrf.mxu1 }
 0x234   : > { %v1484_v30 = vadd.f32 %v1483_v28, %v3824_v24  ;;  %v1595_v35 = vadd.f32 %v1594_v26, %v1482_v27 }
 0x235   : > { %v1485_v31 = vpop.f32.mrf.mxu0  ;;  %v1598_v32 = vpop.f32.mrf.mxu1 }
 0x236   : > { %v1597_v33 = vadd.f32 %v1596_v29, %v1484_v30  ;;  %v1486_v34 = vadd.f32 %v1485_v31, %v3820_v23  ;;  %v1673_v42 = vmul.f32 0.01, %v1595_v35 }
 0x237   : > { %v1487_v60 = vpop.f32.mrf.mxu0  ;;  %v1600_v37 = vpop.f32.mrf.mxu1 }
 0x238   : > { %v1599_v38 = vadd.f32 %v1598_v32, %v1486_v34  ;;  %v1488_v59 = vadd.f32 %v1487_v60, %v3824_v24  ;;  %v1674_v39 = vmul.f32 0.01, %v1597_v33  ;;  %v1705_v53 = vmax.f32 %v1595_v35, %v1673_v42 }
 0x239   : > { %v1491_v61 = vpop.f32.mrf.mxu0  ;;  %v1604_v41 = vpop.f32.mrf.mxu1 }
 0x23a   : > { %v1675_v36 = vmul.f32 0.01, %v1599_v38  ;;  %v1601_v40 = vadd.f32 %v1600_v37, %v1488_v59  ;;  %v1492_v45 = vadd.f32 %v1491_v61, %v3820_v23  ;;  %v1706_v50 = vmax.f32 %v1597_v33, %v1674_v39 }
 0x23b   : > { %v1493_v43 = vpop.f32.mrf.mxu0  ;;  %v1606_v47 = vpop.f32.mrf.mxu1 }
 0x23c   : > { %v1676_v44 = vmul.f32 0.01, %v1601_v40  ;;  %v1494_v46 = vadd.f32 %v1493_v43, %v3824_v24  ;;  %v1707_v48 = vmax.f32 %v1599_v38, %v1675_v36  ;;  %v1605_v57 = vadd.f32 %v1604_v41, %v1492_v45 }
 0x23d   : > { %v1495_v49 = vpop.f32.mrf.mxu0  ;;  %v1608_v52 = vpop.f32.mrf.mxu1 }
 0x23e   : > { %v1708_v51 = vmax.f32 %v1601_v40, %v1676_v44  ;;  %v1607_v54 = vadd.f32 %v1606_v47, %v1494_v46  ;;  %v1496_v55 = vadd.f32 %v1495_v49, %v3820_v23  ;;  %v1737_v1 = vpack.c.bf16 %v1707_v48, %v1705_v53 }
 0x23f   : > { %v1497_v56 = vpop.f32.mrf.mxu0  ;;  %v1610_v62 = vpop.f32.mrf.mxu1  ;;  %v1677_v10 = vmul.f32 0.01, %v1605_v57 }
 0x240   : > { %v1498_v58 = vadd.f32 %v1497_v56, %v3824_v24  ;;  %v1738_v63 = vpack.c.bf16 %v1708_v51, %v1706_v50  ;;  %v1609_v2 = vadd.f32 %v1608_v52, %v1496_v55  ;;  %v1678_v5 = vmul.f32 0.01, %v1607_v54 }
 0x241   : > { %v1501_v0 = vpop.f32.mrf.mxu0  ;;  %v1614_v4 = vpop.f32.mrf.mxu1  ;;  %v1709_v21 = vmax.f32 %v1605_v57, %v1677_v10 }
 0x242   : > { %v1611_v7 = vadd.f32 %v1610_v62, %v1498_v58  ;;  %1920 = vmatprep.mubr.bf16.mxu0 %v1738_v63  ;;  %v1679_v8 = vmul.f32 0.01, %v1609_v2  ;;  %v1502_v12 = vadd.f32 %v1501_v0, %v3820_v23  ;;  %v1710_v18 = vmax.f32 %v1607_v54, %v1678_v5 }
 0x243   : > { %v1503_v9 = vpop.f32.mrf.mxu0  ;;  %1921 = vmatmul.mubr.bf16.vlgmr.msra.gmra.mxu0 %v1737_v1  ;;  %v1616_v13 = vpop.f32.mrf.mxu1 }
 0x244   : > { %v1680_v11 = vmul.f32 0.01, %v1611_v7  ;;  %v1504_v3 = vadd.f32 %v1503_v9, %v3824_v24  ;;  %v1711_v14 = vmax.f32 %v1609_v2, %v1679_v8  ;;  %v1615_v22 = vadd.f32 %v1614_v4, %v1502_v12 }
 0x245   : > { %v1505_v6 = vpop.f32.mrf.mxu0  ;;  %v1618_v17 = vpop.f32.mrf.mxu1 }
 0x246   : > { %v1712_v15 = vmax.f32 %v1611_v7, %v1680_v11  ;;  %v1506_v16 = vadd.f32 %v1505_v6, %v3820_v23  ;;  %v1617_v19 = vadd.f32 %v1616_v13, %v1504_v3  ;;  %v1739_v33 = vpack.c.bf16 %v1711_v14, %v1709_v21 }
 0x247   : > { %v1507_v20 = vpop.f32.mrf.mxu0  ;;  %v1620_v27 = vpop.f32.mrf.mxu1  ;;  %v1681_v60 = vmul.f32 0.01, %v1615_v22 }
 0x248   : > { %v1619_v25 = vadd.f32 %v1618_v17, %v1506_v16  ;;  %v1508_v26 = vadd.f32 %v1507_v20, %v3824_v24  ;;  %v1740_v29 = vpack.c.bf16 %v1712_v15, %v1710_v18  ;;  %v1682_v34 = vmul.f32 0.01, %v1617_v19 }
 0x249   : > { %v1511_v28 = vpop.f32.mrf.mxu0  ;;  %v1624_v32 = vpop.f32.mrf.mxu1  ;;  %v1713_v46 = vmax.f32 %v1615_v22, %v1681_v60 }
 0x24a   : > { %v1683_v30 = vmul.f32 0.01, %v1619_v25  ;;  %v1621_v31 = vadd.f32 %v1620_v27, %v1508_v26  ;;  %1928 = vmatprep.mubr.bf16.mxu0 %v1740_v29  ;;  %v1512_v38 = vadd.f32 %v1511_v28, %v3820_v23  ;;  %v1714_v43 = vmax.f32 %v1617_v19, %v1682_v34 }
 0x24b   : > { %v1513_v35 = vpop.f32.mrf.mxu0  ;;  %v1626_v61 = vpop.f32.mrf.mxu1  ;;  %1929 = vmatmul.mubr.bf16.gmra.mxu0 %v1739_v33 }
 0x24c   : > { %v1684_v37 = vmul.f32 0.01, %v1621_v31  ;;  %v1514_v59 = vadd.f32 %v1513_v35, %v3824_v24  ;;  %v1715_v36 = vmax.f32 %v1619_v25, %v1683_v30  ;;  %v1625_v47 = vadd.f32 %v1624_v32, %v1512_v38 }
 0x24d   : > { %v1515_v39 = vpop.f32.mrf.mxu0  ;;  %v1628_v42 = vpop.f32.mrf.mxu1 }
 0x24e   : > { %v1716_v40 = vmax.f32 %v1621_v31, %v1684_v37  ;;  %v1516_v41 = vadd.f32 %v1515_v39, %v3820_v23  ;;  %v1627_v44 = vadd.f32 %v1626_v61, %v1514_v59  ;;  %v1741_v56 = vpack.c.bf16 %v1715_v36, %v1713_v46 }
 0x24f   : > { %v1517_v45 = vpop.f32.mrf.mxu0  ;;  %v1630_v50 = vpop.f32.mrf.mxu1  ;;  %v1685_v62 = vmul.f32 0.01, %v1625_v47 }
 0x250   : > { %v1629_v48 = vadd.f32 %v1628_v42, %v1516_v41  ;;  %v1518_v49 = vadd.f32 %v1517_v45, %v3824_v24  ;;  %v1742_v52 = vpack.c.bf16 %v1716_v40, %v1714_v43  ;;  %v1686_v57 = vmul.f32 0.01, %v1627_v44 }
 0x251   : > { %v1521_v51 = vpop.f32.mrf.mxu0  ;;  %v1634_v55 = vpop.f32.mrf.mxu1  ;;  %v1717_v3 = vmax.f32 %v1625_v47, %v1685_v62 }
 0x252   : > { %v1687_v53 = vmul.f32 0.01, %v1629_v48  ;;  %v1631_v54 = vadd.f32 %v1630_v50, %v1518_v49  ;;  %1936 = vmatprep.mubr.bf16.mxu0 %v1742_v52  ;;  %v1522_v1 = vadd.f32 %v1521_v51, %v3820_v23  ;;  %v1718_v10 = vmax.f32 %v1627_v44, %v1686_v57 }
 0x253   : > { %v1523_v58 = vpop.f32.mrf.mxu0  ;;  %v1636_v0 = vpop.f32.mrf.mxu1  ;;  %1937 = vmatmul.mubr.bf16.gmra.mxu0 %v1741_v56 }
 0x254   : > { %v1688_v63 = vmul.f32 0.01, %v1631_v54  ;;  %v1524_v2 = vadd.f32 %v1523_v58, %v3824_v24  ;;  %v1719_v4 = vmax.f32 %v1629_v48, %v1687_v53  ;;  %v1635_v13 = vadd.f32 %v1634_v55, %v1522_v1 }
 0x255   : > { %v1525_v7 = vpop.f32.mrf.mxu0  ;;  %v1638_v9 = vpop.f32.mrf.mxu1 }
 0x256   : > { %v1720_v5 = vmax.f32 %v1631_v54, %v1688_v63  ;;  %v1526_v8 = vadd.f32 %v1525_v7, %v3820_v23  ;;  %v1637_v11 = vadd.f32 %v1636_v0, %v1524_v2  ;;  %v1743_v21 = vpack.c.bf16 %v1719_v4, %v1717_v3 }
 0x257   : > { %v1527_v12 = vpop.f32.mrf.mxu0  ;;  %v1640_v15 = vpop.f32.mrf.mxu1  ;;  %v1689_v26 = vmul.f32 0.01, %v1635_v13 }
 0x258   : > { %v1639_v6 = vadd.f32 %v1638_v9, %v1526_v8  ;;  %v1528_v14 = vadd.f32 %v1527_v12, %v3824_v24  ;;  %v1744_v17 = vpack.c.bf16 %v1720_v5, %v1718_v10  ;;  %v1690_v22 = vmul.f32 0.01, %v1637_v11 }
 0x259   : > { %v1531_v16 = vpop.f32.mrf.mxu0  ;;  %v1644_v20 = vpop.f32.mrf.mxu1  ;;  %v1721_v59 = vmax.f32 %v1635_v13, %v1689_v26 }
 0x25a   : > { %v1691_v18 = vmul.f32 0.01, %v1639_v6  ;;  %v1641_v19 = vadd.f32 %v1640_v15, %v1528_v14  ;;  %1944 = vmatprep.mubr.bf16.mxu0 %v1744_v17  ;;  %v1532_v28 = vadd.f32 %v1531_v16, %v3820_v23  ;;  %v1722_v60 = vmax.f32 %v1637_v11, %v1690_v22 }
 0x25b   : > { %v1533_v25 = vpop.f32.mrf.mxu0  ;;  %v1646_v30 = vpop.f32.mrf.mxu1  ;;  %1945 = vmatmul.mubr.bf16.gmra.mxu0 %v1743_v21 }
 0x25c   : > { %v1692_v27 = vmul.f32 0.01, %v1641_v19  ;;  %v1534_v29 = vadd.f32 %v1533_v25, %v3824_v24  ;;  %v1723_v32 = vmax.f32 %v1639_v6, %v1691_v18  ;;  %v1645_v61 = vadd.f32 %v1644_v20, %v1532_v28 }
 0x25d   : > { %v1535_v31 = vpop.f32.mrf.mxu0  ;;  %v1648_v35 = vpop.f32.mrf.mxu1 }
 0x25e   : > { %v1724_v33 = vmax.f32 %v1641_v19, %v1692_v27  ;;  %v1536_v34 = vadd.f32 %v1535_v31, %v3820_v23  ;;  %v1647_v37 = vadd.f32 %v1646_v30, %v1534_v29  ;;  %v1745_v46 = vpack.c.bf16 %v1723_v32, %v1721_v59 }
 0x25f   : > { %v1537_v38 = vpop.f32.mrf.mxu0  ;;  %v1650_v40 = vpop.f32.mrf.mxu1  ;;  %v1693_v49 = vmul.f32 0.01, %v1645_v61 }
 0x260   : > { %v1649_v39 = vadd.f32 %v1648_v35, %v1536_v34  ;;  %v1538_v36 = vadd.f32 %v1537_v38, %v3824_v24  ;;  %v1746_v42 = vpack.c.bf16 %v1724_v33, %v1722_v60  ;;  %v1694_v47 = vmul.f32 0.01, %v1647_v37 }
 0x261   : > { %v1541_v41 = vpop.f32.mrf.mxu0  ;;  %v1725_v2 = vmax.f32 %v1645_v61, %v1693_v49  ;;  %v3861_v49 = vld [vmem:[%s4016_s6] ss:$0 sm:$0xff] }
 0x262   : > { %v1695_v43 = vmul.f32 0.01, %v1649_v39  ;;  %v1651_v44 = vadd.f32 %v1650_v40, %v1538_v36  ;;  %v1654_v45 = vpop.f32.mrf.mxu1  ;;  %1952 = vmatprep.mubr.bf16.mxu0 %v1746_v42  ;;  %v1542_v51 = vadd.f32 %v1541_v41, %v3820_v23  ;;  %v1726_v62 = vmax.f32 %v1647_v37, %v1694_v47  ;;  %v3133_v47 = vld [vmem:[#allocation10] sm:$0xff]  }
 0x263   : > { %v1543_v48 = vpop.f32.mrf.mxu0  ;;  %1953 = vmatmul.mubr.bf16.gmra.mxu0 %v1745_v46  ;;  %v3132_v46 = vld [vmem:[#allocation10 + $0x8] sm:$0xff]  }
 0x264   : > { %v1696_v50 = vmul.f32 0.01, %v1651_v44  ;;  %v1544_v52 = vadd.f32 %v1543_v48, %v3824_v24  ;;  %v1656_v53 = vpop.f32.mrf.mxu1  ;;  %v1727_v55 = vmax.f32 %v1649_v39, %v1695_v43  ;;  %v1655_v0 = vadd.f32 %v1654_v45, %v1542_v51  ;;  %v3128_v43 = vld [vmem:[#allocation10 + $0x28] sm:$0xff]   ;;  %v3131_v45 = vld [vmem:[#allocation10 + $0x10] sm:$0xff]  }
 0x265   : > { %v1545_v54 = vpop.f32.mrf.mxu0  ;;  %2841 = vmatprep.subr.bf16.mxu1 %v3128_v43 }
 0x266   : > { %v1728_v56 = vmax.f32 %v1651_v44, %v1696_v50  ;;  %v1546_v57 = vadd.f32 %v1545_v54, %v3820_v23  ;;  %v1658_v58 = vpop.f32.mrf.mxu1  ;;  %v1657_v63 = vadd.f32 %v1656_v53, %v1544_v52  ;;  %v1747_v3 = vpack.c.bf16 %v1727_v55, %v1725_v2  ;;  %2842 = vmatpush3.bf16.msra.mxu1 %v3128_v43  ;;  %v3130_v44 = vld [vmem:[#allocation10 + $0x18] sm:$0xff]  }
 0x267   : > { %v1547_v1 = vpop.f32.mrf.mxu0  ;;  %v1697_v14 = vmul.f32 0.01, %v1655_v0 }
 0x268   : > { %v1659_v7 = vadd.f32 %v1658_v58, %v1546_v57  ;;  %v1548_v4 = vadd.f32 %v1547_v1, %v3824_v24  ;;  %v1660_v5 = vpop.f32.mrf.mxu1  ;;  %v1748_v9 = vpack.c.bf16 %v1728_v56, %v1726_v62  ;;  %v1698_v13 = vmul.f32 0.01, %v1657_v63 }
 0x269   : > { %v1551_v8 = vpop.f32.mrf.mxu0  ;;  %v1729_v29 = vmax.f32 %v1655_v0, %v1697_v14 }
 0x26a   : > { %v1699_v10 = vmul.f32 0.01, %v1659_v7  ;;  %v1661_v11 = vadd.f32 %v1660_v5, %v1548_v4  ;;  %v1664_v12 = vpop.f32.mrf.mxu1  ;;  %1960 = vmatprep.mubr.bf16.mxu0 %v1748_v9  ;;  %v1552_v16 = vadd.f32 %v1551_v8, %v3820_v23  ;;  %v1730_v27 = vmax.f32 %v1657_v63, %v1698_v13 }
 0x26b   : > { %v1553_v6 = vpop.f32.mrf.mxu0  ;;  %1961 = vmatmul.mubr.bf16.gmra.mxu0 %v1747_v3 }
 0x26c   : > { %v1700_v15 = vmul.f32 0.01, %v1661_v11  ;;  %v1554_v17 = vadd.f32 %v1553_v6, %v3824_v24  ;;  %v1666_v18 = vpop.f32.mrf.mxu1  ;;  %v1731_v20 = vmax.f32 %v1659_v7, %v1699_v10  ;;  %v1665_v30 = vadd.f32 %v1664_v12, %v1552_v16 }
 0x26d   : > { %v1555_v19 = vpop.f32.mrf.mxu0 }
 0x26e   : > { %v1732_v21 = vmax.f32 %v1661_v11, %v1700_v15  ;;  %v1667_v22 = vadd.f32 %v1666_v18, %v1554_v17  ;;  %v1556_v25 = vadd.f32 %v1555_v19, %v3820_v23  ;;  %v1668_v26 = vpop.f32.mrf.mxu1  ;;  %v1749_v38 = vpack.c.bf16 %v1731_v20, %v1729_v29 }
 0x26f   : > { %v1557_v28 = vpop.f32.mrf.mxu0  ;;  %v1701_v59 = vmul.f32 0.01, %v1665_v30 }
 0x270   : > { %v1669_v31 = vadd.f32 %v1668_v26, %v1556_v25  ;;  %v1558_v32 = vadd.f32 %v1557_v28, %v3824_v24  ;;  %v1670_v33 = vpop.f32.mrf.mxu1  ;;  %v1750_v34 = vpack.c.bf16 %v1732_v21, %v1730_v27  ;;  %v1702_v35 = vmul.f32 0.01, %v1667_v22  ;;  %v3129_v24 = vld [vmem:[#allocation10 + $0x20] sm:$0xff]  }
 0x271   : > { %v1733_v40 = vmax.f32 %v1665_v30, %v1701_v59  ;;  %2843 = vmatprep.subr.bf16.mxu1 %v3129_v24 }
 0x272   : > { %v1703_v60 = vmul.f32 0.01, %v1669_v31  ;;  %v1671_v37 = vadd.f32 %v1670_v33, %v1558_v32  ;;  %1968 = vmatprep.mubr.bf16.mxu0 %v1750_v34  ;;  %v1734_v39 = vmax.f32 %v1667_v22, %v1702_v35  ;;  %2844 = vmatpush3.bf16.msra.mxu1 %v3129_v24 }
 0x273   : > { %1969 = vmatmul.mubr.bf16.gmra.mxu0 %v1749_v38  ;;  %2845 = vmatprep.subr.bf16.mxu1 %v3130_v44 }
 0x274   : > { %v1704_v61 = vmul.f32 0.01, %v1671_v37  ;;  %v1735_v23 = vmax.f32 %v1669_v31, %v1703_v60 }
 0x276   : > { %v1736_v36 = vmax.f32 %v1671_v37, %v1704_v61  ;;  %v1751_v42 = vpack.c.bf16 %v1735_v23, %v1733_v40  ;;  %2846 = vmatpush3.bf16.msra.mxu1 %v3130_v44 }
 0x277   : > { %2847 = vmatprep.subr.bf16.mxu1 %v3131_v45 }
 0x278   : > { %v1752_v41 = vpack.c.bf16 %v1736_v36, %v1734_v39 }
 0x27a   : > { %1976 = vmatprep.mubr.bf16.mxu0 %v1752_v41  ;;  %2848 = vmatpush3.bf16.msra.mxu1 %v3131_v45 }
 0x27b   : > { %1977 = vmatmul.mubr.bf16.gmra.mxu0 %v1751_v42  ;;  %2849 = vmatprep.subr.bf16.mxu1 %v3132_v46 }
 0x27e   : > { %2850 = vmatpush3.bf16.msra.mxu1 %v3132_v46 }
 0x27f   : > { %2851 = vmatprep.subr.bf16.mxu1 %v3133_v47 }
 0x282   : > { %2852 = vmatpush3.bf16.msra.mxu1 %v3133_v47 }
 0x303   : > { %v2773_v48 = vpop.f32.mrf.mxu0 }
 0x305   : > { %v2774_v50 = vpop.f32.mrf.mxu0 }
 0x306   : > { %v2775_v51 = vadd.f32 %v2774_v50, %v2773_v48 }
 0x307   : > { %v2776_v52 = vpop.f32.mrf.mxu0 }
 0x308   : > { %v1923_v53 = vadd.f32 %v2775_v51, %v3861_v49 }
 0x309   : > { %v2777_v54 = vpop.f32.mrf.mxu0 }
 0x30a   : > { %v2778_v55 = vadd.f32 %v2777_v54, %v2776_v52  ;;  %v1985_v56 = vmul.f32 0.01, %v1923_v53 }
 0x30b   : > { %v2779_v58 = vpop.f32.mrf.mxu0 }
 0x30c   : > { %v1926_v57 = vadd.f32 %v2778_v55, %v3861_v49  ;;  %v2001_v2 = vmax.f32 %v1923_v53, %v1985_v56 }
 0x30d   : > { %v2780_v63 = vpop.f32.mrf.mxu0 }
 0x30e   : > { %v1986_v62 = vmul.f32 0.01, %v1926_v57  ;;  %v2781_v1 = vadd.f32 %v2780_v63, %v2779_v58 }
 0x30f   : > { %v2782_v7 = vpop.f32.mrf.mxu0 }
 0x310   : > { %v2002_v0 = vmax.f32 %v1926_v57, %v1986_v62  ;;  %v1931_v4 = vadd.f32 %v2781_v1, %v3861_v49 }
 0x311   : > { %v2783_v5 = vpop.f32.mrf.mxu0 }
 0x312   : > { %v2017_v8 = vpack.c.bf16 %v2002_v0, %v2001_v2  ;;  %v2784_v9 = vadd.f32 %v2783_v5, %v2782_v7  ;;  %v1987_v11 = vmul.f32 0.01, %v1931_v4 }
 0x313   : > { %v2785_v10 = vpop.f32.mrf.mxu0 }
 0x314   : > { %2853 = vmatprep.mubr.bf16.mxu1 %v2017_v8  ;;  %v1934_v12 = vadd.f32 %v2784_v9, %v3861_v49  ;;  %v2003_v15 = vmax.f32 %v1931_v4, %v1987_v11 }
 0x315   : > { %v2786_v3 = vpop.f32.mrf.mxu0 }
 0x316   : > { %v1988_v13 = vmul.f32 0.01, %v1934_v12  ;;  %v2787_v6 = vadd.f32 %v2786_v3, %v2785_v10 }
 0x317   : > { %v2788_v14 = vpop.f32.mrf.mxu0 }
 0x318   : > { %v2004_v16 = vmax.f32 %v1934_v12, %v1988_v13  ;;  %v1939_v17 = vadd.f32 %v2787_v6, %v3861_v49 }
 0x319   : > { %v2789_v18 = vpop.f32.mrf.mxu0 }
 0x31a   : > { %v2018_v19 = vpack.c.bf16 %v2004_v16, %v2003_v15  ;;  %v2790_v20 = vadd.f32 %v2789_v18, %v2788_v14  ;;  %v1989_v22 = vmul.f32 0.01, %v1939_v17 }
 0x31b   : > { %v2791_v21 = vpop.f32.mrf.mxu0 }
 0x31c   : > { %v1942_v25 = vadd.f32 %v2790_v20, %v3861_v49  ;;  %2854 = vmatmul.mubr.bf16.vlgmr.msra.gmra.mxu1 %v2018_v19  ;;  %v2005_v30 = vmax.f32 %v1939_v17, %v1989_v22 }
 0x31d   : > { %v2792_v26 = vpop.f32.mrf.mxu0 }
 0x31e   : > { %v1990_v27 = vmul.f32 0.01, %v1942_v25  ;;  %v2793_v28 = vadd.f32 %v2792_v26, %v2791_v21 }
 0x31f   : > { %v2794_v29 = vpop.f32.mrf.mxu0 }
 0x320   : > { %v2006_v31 = vmax.f32 %v1942_v25, %v1990_v27  ;;  %v1947_v32 = vadd.f32 %v2793_v28, %v3861_v49 }
 0x321   : > { %v2795_v33 = vpop.f32.mrf.mxu0 }
 0x322   : > { %v2796_v34 = vadd.f32 %v2795_v33, %v2794_v29  ;;  %v2019_v35 = vpack.c.bf16 %v2006_v31, %v2005_v30  ;;  %v1991_v37 = vmul.f32 0.01, %v1947_v32  ;;  %v2666_v31 = vld [vmem:[%s4018_s8] ss:$0 sm:$0xff] }
 0x323   : > { %v2797_v60 = vpop.f32.mrf.mxu0 }
 0x324   : > { %v1950_v38 = vadd.f32 %v2796_v34, %v3861_v49  ;;  %2857 = vmatprep.mubr.bf16.mxu1 %v2019_v35  ;;  %v2007_v36 = vmax.f32 %v1947_v32, %v1991_v37 }
 0x325   : > { %v2798_v59 = vpop.f32.mrf.mxu0 }
 0x326   : > { %v1992_v61 = vmul.f32 0.01, %v1950_v38  ;;  %v2799_v39 = vadd.f32 %v2798_v59, %v2797_v60 }
 0x327   : > { %v2800_v23 = vpop.f32.mrf.mxu0 }
 0x328   : > { %v2008_v40 = vmax.f32 %v1950_v38, %v1992_v61  ;;  %v1955_v41 = vadd.f32 %v2799_v39, %v3861_v49 }
 0x329   : > { %v2801_v42 = vpop.f32.mrf.mxu0 }
 0x32a   : > { %v2802_v43 = vadd.f32 %v2801_v42, %v2800_v23  ;;  %v2020_v24 = vpack.c.bf16 %v2008_v40, %v2007_v36  ;;  %v1993_v45 = vmul.f32 0.01, %v1955_v41 }
 0x32b   : > { %v2803_v44 = vpop.f32.mrf.mxu0 }
 0x32c   : > { %v1958_v46 = vadd.f32 %v2802_v43, %v3861_v49  ;;  %2858 = vmatmul.mubr.bf16.gmra.mxu1 %v2020_v24  ;;  %v2009_v52 = vmax.f32 %v1955_v41, %v1993_v45 }
 0x32d   : > { %v2804_v47 = vpop.f32.mrf.mxu0 }
 0x32e   : > { %v1994_v48 = vmul.f32 0.01, %v1958_v46  ;;  %v2805_v50 = vadd.f32 %v2804_v47, %v2803_v44 }
 0x32f   : > { %v2806_v51 = vpop.f32.mrf.mxu0 }
 0x330   : > { %v2010_v53 = vmax.f32 %v1958_v46, %v1994_v48  ;;  %v1963_v54 = vadd.f32 %v2805_v50, %v3861_v49 }
 0x331   : > { %v2807_v55 = vpop.f32.mrf.mxu0 }
 0x332   : > { %v2808_v56 = vadd.f32 %v2807_v55, %v2806_v51  ;;  %v2021_v57 = vpack.c.bf16 %v2010_v53, %v2009_v52  ;;  %v1995_v62 = vmul.f32 0.01, %v1963_v54 }
 0x333   : > { %v2809_v58 = vpop.f32.mrf.mxu0 }
 0x334   : > { %v1966_v63 = vadd.f32 %v2808_v56, %v3861_v49  ;;  %2861 = vmatprep.mubr.bf16.mxu1 %v2021_v57  ;;  %v2011_v4 = vmax.f32 %v1963_v54, %v1995_v62 }
 0x335   : > { %v2810_v1 = vpop.f32.mrf.mxu0 }
 0x336   : > { %v1996_v2 = vmul.f32 0.01, %v1966_v63  ;;  %v2811_v0 = vadd.f32 %v2810_v1, %v2809_v58 }
 0x337   : > { %v2812_v7 = vpop.f32.mrf.mxu0 }
 0x338   : > { %v2012_v5 = vmax.f32 %v1966_v63, %v1996_v2  ;;  %v1971_v8 = vadd.f32 %v2811_v0, %v3861_v49 }
 0x339   : > { %v2813_v9 = vpop.f32.mrf.mxu0 }
 0x33a   : > { %v2814_v10 = vadd.f32 %v2813_v9, %v2812_v7  ;;  %v2022_v11 = vpack.c.bf16 %v2012_v5, %v2011_v4  ;;  %v1997_v3 = vmul.f32 0.01, %v1971_v8 }
 0x33b   : > { %v2815_v12 = vpop.f32.mrf.mxu0 }
 0x33c   : > { %v1974_v13 = vadd.f32 %v2814_v10, %v3861_v49  ;;  %2862 = vmatmul.mubr.bf16.gmra.mxu1 %v2022_v11  ;;  %v2013_v17 = vmax.f32 %v1971_v8, %v1997_v3 }
 0x33d   : > { %v2816_v6 = vpop.f32.mrf.mxu0 }
 0x33e   : > { %v1998_v14 = vmul.f32 0.01, %v1974_v13  ;;  %v2817_v15 = vadd.f32 %v2816_v6, %v2815_v12 }
 0x33f   : > { %v2818_v16 = vpop.f32.mrf.mxu0 }
 0x340   : > { %v2014_v18 = vmax.f32 %v1974_v13, %v1998_v14  ;;  %v1979_v19 = vadd.f32 %v2817_v15, %v3861_v49 }
 0x341   : > { %v2819_v20 = vpop.f32.mrf.mxu0 }
 0x342   : > { %v2820_v21 = vadd.f32 %v2819_v20, %v2818_v16  ;;  %v2023_v22 = vpack.c.bf16 %v2014_v18, %v2013_v17  ;;  %v1999_v25 = vmul.f32 0.01, %v1979_v19 }
 0x344   : > { %v1982_v26 = vadd.f32 %v2820_v21, %v3861_v49  ;;  %2865 = vmatprep.mubr.bf16.mxu1 %v2023_v22  ;;  %v2015_v28 = vmax.f32 %v1979_v19, %v1999_v25 }
 0x346   : > { %v2000_v27 = vmul.f32 0.01, %v1982_v26 }
 0x348   : > { %v2016_v29 = vmax.f32 %v1982_v26, %v2000_v27 }
 0x34a   : > { %v2024_v30 = vpack.c.bf16 %v2016_v29, %v2015_v28 }
 0x34c   : > { %2866 = vmatmul.mubr.bf16.gmra.mxu1 %v2024_v30 }
 0x3dc   : > { %v2855_v32 = vpop.f32.mrf.mxu1 }
 0x3dd   : > { %v2139_v33 = vadd.f32 %v2855_v32, %v2666_v31 }
 0x3de   : > { %v2130_v34 = vpop.f32.mrf.mxu1 }
 0x3df   : > { %v2131_v35 = vadd.f32 %v2666_v31, %v2130_v34  ;;  %2197 = vmax.xlane.f32.xlu1 %v2139_v33 }
 0x3e0   : > { %v2856_v60 = vpop.f32.mrf.mxu1 }
 0x3e1   : > { %v2142_v37 = vadd.f32 %v2856_v60, %v2666_v31  ;;  %2193 = vmax.xlane.f32.xlu0 %v2131_v35 }
 0x3e2   : > { %v2133_v38 = vpop.f32.mrf.mxu1 }
 0x3e3   : > { %v2134_v49 = vadd.f32 %v2666_v31, %v2133_v38  ;;  %2199 = vmax.xlane.f32.xlu1 %v2142_v37 }
 0x3e5   : > { %2195 = vmax.xlane.f32.xlu0 %v2134_v49 }
 0x3ec   : > { %v2859_v59 = vpop.f32.mrf.mxu1 }
 0x3ed   : > { %v2155_v61 = vadd.f32 %v2859_v59, %v2666_v31 }
 0x3ee   : > { %v2146_v39 = vpop.f32.mrf.mxu1 }
 0x3ef   : > { %2205 = vmax.xlane.f32.xlu0 %v2155_v61  ;;  %v2147_v36 = vadd.f32 %v2666_v31, %v2146_v39 }
 0x3f0   : > { %v2860_v23 = vpop.f32.mrf.mxu1 }
 0x3f1   : > { %v2158_v40 = vadd.f32 %v2860_v23, %v2666_v31 }
 0x3f2   : > { %v2149_v41 = vpop.f32.mrf.mxu1 }
 0x3f3   : > { %2207 = vmax.xlane.f32.xlu1 %v2158_v40  ;;  %2201 = vmax.xlane.f32.xlu0 %v2147_v36  ;;  %v3882_v42 = vadd.f32 %v2666_v31, %v2149_v41 }
 0x3f7   : > { %2203 = vmax.xlane.f32.xlu1 %v3882_v42 }
 0x3fc   : > { %v2863_v43 = vpop.f32.mrf.mxu1 }
 0x3fd   : > { %v3885_v24 = vadd.f32 %v2863_v43, %v2666_v31 }
 0x3fe   : > { %v2162_v44 = vpop.f32.mrf.mxu1 }
 0x3ff   : > { %2213 = vmax.xlane.f32.xlu0 %v3885_v24  ;;  %v3888_v46 = vadd.f32 %v2666_v31, %v2162_v44 }
 0x400   : > { %v2864_v45 = vpop.f32.mrf.mxu1 }
 0x401   : > { %v3890_v47 = vadd.f32 %v2864_v45, %v2666_v31 }
 0x402   : > { %v2165_v48 = vpop.f32.mrf.mxu1 }
 0x403   : > { %2215 = vmax.xlane.f32.xlu1 %v3890_v47  ;;  %2209 = vmax.xlane.f32.xlu0 %v3888_v46  ;;  %v3894_v50 = vadd.f32 %v2666_v31, %v2165_v48 }
 0x407   : > { %2211 = vmax.xlane.f32.xlu1 %v3894_v50 }
 0x40c   : > { %v2867_v51 = vpop.f32.mrf.mxu1 }
 0x40d   : > { %v3900_v56 = vadd.f32 %v2867_v51, %v2666_v31 }
 0x40e   : > { %v2178_v52 = vpop.f32.mrf.mxu1 }
 0x40f   : > { %v3897_v53 = vadd.f32 %v2666_v31, %v2178_v52 }
 0x410   : > { %v2868_v54 = vpop.f32.mrf.mxu1 }
 0x411   : > { %2217 = vmax.xlane.f32.xlu0 %v3897_v53  ;;  %v3906_v58 = vadd.f32 %v2868_v54, %v2666_v31 }
 0x412   : > { %v2181_v55 = vpop.f32.mrf.mxu1 }
 0x413   : > { %v3902_v57 = vadd.f32 %v2666_v31, %v2181_v55 }
 0x415   : > { %2219 = vmax.xlane.f32.xlu1 %v3902_v57  ;;  %2221 = vmax.xlane.f32.xlu0 %v3900_v56 }
 0x419   : > { %2223 = vmax.xlane.f32.xlu1 %v3906_v58 }
 0x468   : > { %v2198_v62 = vpop.xlane.xlu1 %2197 }
 0x469   : > { %v2227_v63 = vsub.f32 %v2139_v33, %v2198_v62 }
 0x46a   : > { %v2194_v1 = vpop.xlane.xlu0 %2193 }
 0x46b   : > { %v2245_v2 = vmul.f32 1.442695, %v2227_v63  ;;  %v2225_v0 = vsub.f32 %v2131_v35, %v2194_v1 }
 0x46c   : > { %v2200_v7 = vpop.xlane.xlu1 %2199 }
 0x46d   : > { %3134 = vpow2.f32 %v2245_v2  ;;  %v2241_v4 = vmul.f32 1.442695, %v2225_v0  ;;  %v2228_v5 = vsub.f32 %v2142_v37, %v2200_v7 }
 0x46e   : > { %v2196_v8 = vpop.xlane.xlu0 %2195 }
 0x46f   : > { %v2247_v9 = vmul.f32 1.442695, %v2228_v5  ;;  %v2226_v10 = vsub.f32 %v2134_v49, %v2196_v8  ;;  %3136 = vpow2.f32 %v2241_v4 }
 0x471   : > { %3138 = vpow2.f32 %v2247_v9  ;;  %v2243_v11 = vmul.f32 1.442695, %v2226_v10 }
 0x473   : > { %3140 = vpow2.f32 %v2243_v11 }
 0x478   : > { %v2206_v12 = vpop.xlane.xlu0 %2205 }
 0x479   : > { %v2231_v3 = vsub.f32 %v2155_v61, %v2206_v12 }
 0x47a   : > { %v3909_v13 = vpop.eup %3134 }
 0x47b   : > { %v2253_v6 = vmul.f32 1.442695, %v2231_v3  ;;  %2277 = vadd.xlane.f32.xlu0 %v3909_v13 }
 0x47c   : > { %v2208_v14 = vpop.xlane.xlu1 %2207  ;;  %v2202_v15 = vpop.xlane.xlu0 %2201 }
 0x47d   : > { %v3912_v16 = vpop.eup %3136  ;;  %3142 = vpow2.f32 %v2253_v6  ;;  %v2232_v17 = vsub.f32 %v2158_v40, %v2208_v14  ;;  %v2229_v18 = vsub.f32 %v2147_v36, %v2202_v15 }
 0x47e   : > { %v3914_v19 = vpop.eup %3138 }
 0x47f   : > { %v2255_v20 = vmul.f32 1.442695, %v2232_v17  ;;  %v2249_v21 = vmul.f32 1.442695, %v2229_v18  ;;  %2279 = vadd.xlane.f32.xlu1 %v3914_v19  ;;  %2273 = vadd.xlane.f32.xlu0 %v3912_v16 }
 0x480   : > { %v2204_v22 = vpop.xlane.xlu1 %2203  ;;  %v3919_v26 = vpop.eup %3140 }
 0x481   : > { %3144 = vpow2.f32 %v2255_v20  ;;  %v2230_v25 = vsub.f32 %v3882_v42, %v2204_v22 }
 0x482   : > { %3146 = vpow2.f32 %v2249_v21 }
 0x483   : > { %v2251_v27 = vmul.f32 1.442695, %v2230_v25  ;;  %2275 = vadd.xlane.f32.xlu1 %v3919_v26 }
 0x485   : > { %3148 = vpow2.f32 %v2251_v27 }
 0x488   : > { %v2214_v28 = vpop.xlane.xlu0 %2213 }
 0x489   : > { %v2235_v29 = vsub.f32 %v3885_v24, %v2214_v28 }
 0x48a   : > { %v3923_v30 = vpop.eup %3142 }
 0x48b   : > { %v2261_v31 = vmul.f32 1.442695, %v2235_v29  ;;  %2285 = vadd.xlane.f32.xlu0 %v3923_v30 }
 0x48c   : > { %v2216_v32 = vpop.xlane.xlu1 %2215  ;;  %v2210_v33 = vpop.xlane.xlu0 %2209 }
 0x48d   : > { %3150 = vpow2.f32 %v2261_v31  ;;  %v2236_v34 = vsub.f32 %v3890_v47, %v2216_v32  ;;  %v2233_v35 = vsub.f32 %v3888_v46, %v2210_v33 }
 0x48e   : > { %v3928_v60 = vpop.eup %3144 }
 0x48f   : > { %v3930_v37 = vpop.eup %3146  ;;  %v2263_v38 = vmul.f32 1.442695, %v2236_v34  ;;  %v2257_v49 = vmul.f32 1.442695, %v2233_v35  ;;  %2287 = vadd.xlane.f32.xlu1 %v3928_v60 }
 0x490   : > { %2281 = vadd.xlane.f32.xlu0 %v3930_v37  ;;  %v2212_v59 = vpop.xlane.xlu1 %2211 }
 0x491   : > { %3152 = vpow2.f32 %v2263_v38  ;;  %v2234_v61 = vsub.f32 %v3894_v50, %v2212_v59 }
 0x492   : > { %v3935_v39 = vpop.eup %3148  ;;  %3154 = vpow2.f32 %v2257_v49 }
 0x493   : > { %v2259_v23 = vmul.f32 1.442695, %v2234_v61  ;;  %2283 = vadd.xlane.f32.xlu1 %v3935_v39 }
 0x495   : > { %3156 = vpow2.f32 %v2259_v23 }
 0x49a   : > { %v3938_v36 = vpop.eup %3150  ;;  %v2218_v40 = vpop.xlane.xlu0 %2217 }
 0x49b   : > { %v2237_v41 = vsub.f32 %v3897_v53, %v2218_v40  ;;  %2293 = vadd.xlane.f32.xlu0 %v3938_v36 }
 0x49d   : > { %v2265_v42 = vmul.f32 1.442695, %v2237_v41 }
 0x49e   : > { %v3942_v43 = vpop.eup %3152  ;;  %v2220_v24 = vpop.xlane.xlu1 %2219 }
 0x49f   : > { %v2222_v44 = vpop.xlane.xlu0 %2221  ;;  %v3944_v45 = vpop.eup %3154  ;;  %3158 = vpow2.f32 %v2265_v42  ;;  %v2238_v46 = vsub.f32 %v3902_v57, %v2220_v24  ;;  %2295 = vadd.xlane.f32.xlu1 %v3942_v43 }
 0x4a0   : > { %v2239_v47 = vsub.f32 %v3900_v56, %v2222_v44  ;;  %2289 = vadd.xlane.f32.xlu0 %v3944_v45 }
 0x4a1   : > { %v2267_v48 = vmul.f32 1.442695, %v2238_v46 }
 0x4a2   : > { %v2269_v50 = vmul.f32 1.442695, %v2239_v47  ;;  %v3950_v51 = vpop.eup %3156  ;;  %v2224_v52 = vpop.xlane.xlu1 %2223 }
 0x4a3   : > { %3160 = vpow2.f32 %v2267_v48  ;;  %v2240_v53 = vsub.f32 %v3906_v58, %v2224_v52  ;;  %2291 = vadd.xlane.f32.xlu1 %v3950_v51 }
 0x4a4   : > { %3162 = vpow2.f32 %v2269_v50 }
 0x4a5   : > { %v2271_v54 = vmul.f32 1.442695, %v2240_v53 }
 0x4a7   : > { %3164 = vpow2.f32 %v2271_v54 }
 0x4ac   : > { %v3954_v55 = vpop.eup %3158 }
 0x4ad   : > { %2297 = vadd.xlane.f32.xlu0 %v3954_v55 }
 0x4b0   : > { %v3957_v56 = vpop.eup %3160 }
 0x4b1   : > { %v3959_v57 = vpop.eup %3162  ;;  %2299 = vadd.xlane.f32.xlu1 %v3957_v56 }
 0x4b2   : > { %2301 = vadd.xlane.f32.xlu0 %v3959_v57 }
 0x4b4   : > { %v3963_v62 = vpop.eup %3164 }
 0x4b5   : > { %2303 = vadd.xlane.f32.xlu1 %v3963_v62 }
 0x504   : > { %v2278_v58 = vpop.xlane.xlu0 %2277 }
 0x505   : > { %3166 = vrcp.f32 %v2278_v58 }
 0x508   : > { %v2280_v63 = vpop.xlane.xlu1 %2279  ;;  %v2274_v1 = vpop.xlane.xlu0 %2273 }
 0x509   : > { %3168 = vrcp.f32 %v2280_v63 }
 0x50a   : > { %3170 = vrcp.f32 %v2274_v1 }
 0x50c   : > { %v2276_v2 = vpop.xlane.xlu1 %2275 }
 0x50d   : > { %3172 = vrcp.f32 %v2276_v2 }
 0x512   : > { %v3167_v0 = vpop.eup %3166 }
 0x513   : > { %v2310_v5 = vmul.f32 %v3167_v0, %v3909_v13 }
 0x514   : > { %v2286_v7 = vpop.xlane.xlu0 %2285 }
 0x515   : > { %3174 = vrcp.f32 %v2286_v7 }
 0x516   : > { %v3169_v4 = vpop.eup %3168 }
 0x517   : > { %v2312_v8 = vmul.f32 %v3169_v4, %v3914_v19  ;;  %v3171_v9 = vpop.eup %3170 }
 0x518   : > { %v2288_v10 = vpop.xlane.xlu1 %2287  ;;  %v2306_v6 = vmul.f32 %v3171_v9, %v3912_v16 }
 0x519   : > { %v2718_v11 = vpack.c.bf16 %v2312_v8, %v2310_v5  ;;  %3176 = vrcp.f32 %v2288_v10  ;;  %v2282_v12 = vpop.xlane.xlu0 %2281 }
 0x51a   : > { %v3173_v3 = vpop.eup %3172  ;;  %3178 = vrcp.f32 %v2282_v12 }
 0x51b   : > { %2750 = vst [vmem:[%s3973_s12 + $0x8] sm:$0xff] %v2718_v11   ;;  %v2308_v13 = vmul.f32 %v3173_v3, %v3919_v26 }
 0x51c   : > { %v2284_v14 = vpop.xlane.xlu1 %2283 }
 0x51d   : > { %v2713_v15 = vpack.c.bf16 %v2308_v13, %v2306_v6  ;;  %3180 = vrcp.f32 %v2284_v14 }
 0x51f   : > { %2714 = vst [vmem:[%s3973_s12] sm:$0xff] %v2713_v15  }
 0x522   : > { %v3175_v17 = vpop.eup %3174 }
 0x523   : > { %v2318_v20 = vmul.f32 %v3175_v17, %v3923_v30 }
 0x524   : > { %v2294_v18 = vpop.xlane.xlu0 %2293 }
 0x525   : > { %3182 = vrcp.f32 %v2294_v18 }
 0x526   : > { %v3177_v19 = vpop.eup %3176 }
 0x527   : > { %v2320_v21 = vmul.f32 %v3177_v19, %v3928_v60  ;;  %v3179_v22 = vpop.eup %3178 }
 0x528   : > { %v2296_v25 = vpop.xlane.xlu1 %2295  ;;  %v2314_v28 = vmul.f32 %v3179_v22, %v3930_v37 }
 0x529   : > { %v2728_v16 = vpack.c.bf16 %v2320_v21, %v2318_v20  ;;  %3184 = vrcp.f32 %v2296_v25  ;;  %v2290_v26 = vpop.xlane.xlu0 %2289 }
 0x52a   : > { %v3181_v27 = vpop.eup %3180  ;;  %3186 = vrcp.f32 %v2290_v26 }
 0x52b   : > { %2752 = vst [vmem:[%s3973_s12 + $0x18] sm:$0xff] %v2728_v16   ;;  %v2316_v29 = vmul.f32 %v3181_v27, %v3935_v39 }
 0x52c   : > { %v2292_v31 = vpop.xlane.xlu1 %2291 }
 0x52d   : > { %v2723_v32 = vpack.c.bf16 %v2316_v29, %v2314_v28  ;;  %3188 = vrcp.f32 %v2292_v31 }
 0x52f   : > { %2751 = vst [vmem:[%s3973_s12 + $0x10] sm:$0xff] %v2723_v32  }
 0x532   : > { %v3183_v30 = vpop.eup %3182 }
 0x533   : > { %v2326_v35 = vmul.f32 %v3183_v30, %v3938_v36 }
 0x536   : > { %v3185_v33 = vpop.eup %3184  ;;  %v2298_v34 = vpop.xlane.xlu0 %2297 }
 0x537   : > { %v2328_v60 = vmul.f32 %v3185_v33, %v3942_v43  ;;  %v3187_v38 = vpop.eup %3186  ;;  %3190 = vrcp.f32 %v2298_v34 }
 0x538   : > { %v2322_v61 = vmul.f32 %v3187_v38, %v3944_v45 }
 0x539   : > { %v2738_v49 = vpack.c.bf16 %v2328_v60, %v2326_v35 }
 0x53a   : > { %v3189_v37 = vpop.eup %3188  ;;  %v2300_v59 = vpop.xlane.xlu1 %2299 }
 0x53b   : > { %2754 = vst [vmem:[%s3973_s12 + $0x28] sm:$0xff] %v2738_v49   ;;  %v2324_v39 = vmul.f32 %v3189_v37, %v3950_v51  ;;  %3192 = vrcp.f32 %v2300_v59  ;;  %v2302_v23 = vpop.xlane.xlu0 %2301 }
 0x53c   : > { %3194 = vrcp.f32 %v2302_v23 }
 0x53d   : > { %v2733_v40 = vpack.c.bf16 %v2324_v39, %v2322_v61 }
 0x53e   : > { %v2304_v41 = vpop.xlane.xlu1 %2303 }
 0x53f   : > { %2753 = vst [vmem:[%s3973_s12 + $0x20] sm:$0xff] %v2733_v40   ;;  %3196 = vrcp.f32 %v2304_v41 }
 0x544   : > { %v3191_v36 = vpop.eup %3190 }
 0x545   : > { %v2330_v43 = vmul.f32 %v3191_v36, %v3954_v55 }
 0x548   : > { %v3193_v42 = vpop.eup %3192 }
 0x549   : > { %v2332_v24 = vmul.f32 %v3193_v42, %v3957_v56  ;;  %v3195_v44 = vpop.eup %3194 }
 0x54a   : > { %v2334_v47 = vmul.f32 %v3195_v44, %v3959_v57 }
 0x54b   : > { %v2743_v46 = vpack.c.bf16 %v2332_v24, %v2330_v43 }
 0x54c   : > { %v3197_v45 = vpop.eup %3196 }
 0x54d   : > { %2755 = vst [vmem:[%s3973_s12 + $0x30] sm:$0xff] %v2743_v46   ;;  %v2336_v48 = vmul.f32 %v3197_v45, %v3963_v62 }
 0x54f   : > { %v2748_v50 = vpack.c.bf16 %v2336_v48, %v2334_v47 }
 0x551   : > { %2756 = vst [vmem:[%s3973_s12 + $0x38] sm:$0xff] %v2748_v50  }
 0x552 PF: > { %p22_p5 = scmp.ge.s32.totalorder %s3563_s23, 4   ;;  %s4039_s30 = smov %s3394_s10 }
 0x553   : > { %s4040_s10 = smov %s3398_s11  ;;  %s4041_s11 = smov %s3574_s21 }
 0x554   : > { %s4042_s12 = smov %s3563_s23  ;;  %24 = sbr.rel (!%p22_p5) target bundleno = 6 (0x6), region = 116 }
 0x559   :  { %2439 = vsyncpa [#allocation3], 1 }
 0x55a   :  { %2441 = vsyncpa [#allocation3 + $0x1], 1 }
 0x55b   :  { %2442 = vsyncpa [#allocation5], 1 }
 0x55c   :  { %2443 = vsyncpa [#allocation8], 1 }
 0x55d   :  { %2444 = vsyncpa [#allocation11], 1 }

</bundles_post_ra>
